<compile_context>
chip_gen: v5e
topology: v5e:2x2
jax: 0.10.0
libtpu: 0.0.40
codegen_flags: <defaults>
</compile_context>

<pallas_src>
import functools

import numpy as np
import jax
import jax.numpy as jnp
from jax import lax
from jax.experimental import pallas as pl
from jax.experimental.pallas import tpu as pltpu

# Small, synthetic hyper-parameters (original module defaults: 512/8/2048).
D_MODEL = 32
N_HEADS = 4
D_K = D_MODEL // N_HEADS
D_FF = 64
EPS = 1e-5  # nn.LayerNorm default

# Rows of the packed (6, D) per-channel vector input.
_BO, _G1, _BE1, _B2, _G2, _BE2 = range(6)

# >= the scoped default on v5e/v6e/v7x and <= physical VMEM everywhere.
_VMEM_LIMIT_BYTES = 32 * 1024 * 1024


def _layer_norm(x, gamma, beta):
    mu = jnp.mean(x, axis=-1, keepdims=True)
    var = jnp.mean((x - mu) ** 2, axis=-1, keepdims=True)
    # rsqrt goes to the EUP slot instead of a true divide on the VPU.
    return (x - mu) * lax.rsqrt(var + EPS) * gamma + beta


def encoder_layer_kernel(x_ref, wqkv_ref, bqkv_ref, wo_ref, w1_ref, b1_ref,
                         w2_ref, vecs_ref, out_ref, attn_ref, *, tb, seq):
    f32 = jnp.float32
    bf16 = jnp.bfloat16

    # ---- multi-head self-attention, one batch element per fori iteration -----
    # Each iteration writes its (S, D) result into out_ref rows and its (H, S, S)
    # attention map into attn_ref[b]; no values are carried across iterations.
    def attn_batch(b, carry):
        row0 = pl.multiple_of(b * seq, 8)                     # sublane-aligned rows
        xg = x_ref[pl.ds(row0, seq), :].astype(bf16)          # (S, D)

        # Fused QKV projection, feature-major: (3D, S) = Wqkv_packed @ xg^T.
        # The 1/sqrt(d_k) scale is folded into the Q rows of wqkv / bqkv.
        qkv_t = lax.dot_general(wqkv_ref[...], xg, (((1,), (1,)), ((), ())),
                                preferred_element_type=f32)   # (3D, S)
        qkv_t = qkv_t + bqkv_ref[...]                         # (3D, 1) bias bcast
        # Head split is a free sublane-aligned reshape (D_K % 8 == 0);
        # one bf16 cast for the whole block, q/k/v are major-dim slices.
        qkv_h = qkv_t.reshape(3 * N_HEADS, D_K, seq).astype(bf16)
        qh = qkv_h[:N_HEADS]                                  # (H, d_k, S)
        kh = qkv_h[N_HEADS:2 * N_HEADS]                       # (H, d_k, S)
        vh = qkv_h[2 * N_HEADS:]                              # (H, d_k, S)

        # scores[h, s, t] = sum_d q[h, d, s] * k[h, d, t]  (head-batched MXU op)
        scores = lax.dot_general(qh, kh, (((1,), (1,)), ((0,), (0,))),
                                 preferred_element_type=f32)  # (H, S, S)
        scores = scores - jnp.max(scores, axis=-1, keepdims=True)
        e = jnp.exp(scores)
        p = e * pl.reciprocal(jnp.sum(e, axis=-1, keepdims=True), approx=True)
        attn_ref[b] = p.astype(attn_ref.dtype)                # one (H, S, S) store

        # ctx_t[h, d, s] = sum_t v[h, d, t] * p[h, s, t]
        ctx_t = lax.dot_general(vh, p.astype(bf16), (((2,), (2,)), ((0,), (0,))),
                                preferred_element_type=f32)   # (H, d_k, S)
        ctx_t = ctx_t.reshape(D_MODEL, seq).astype(bf16)      # heads merge free

        # attn_out[s, i] = sum_d ctx_t[d, s] * Wo[d, i]  -> token-major (S, D)
        out_b = lax.dot_general(ctx_t, wo_ref[...], (((0,), (0,)), ((), ())),
                                preferred_element_type=f32)
        out_ref[pl.ds(row0, seq), :] = out_b                  # stage in out block
        return carry

    lax.fori_loop(0, tb, attn_batch, 0, unroll=True)

    # ---- Add & LayerNorm (attention sub-layer), flattened over R tokens -------
    x = x_ref[...]                                            # (R, D) f32
    attn_out = out_ref[...] + vecs_ref[_BO:_BO + 1, :]        # + output-proj bias
    y = _layer_norm(x + attn_out,
                    vecs_ref[_G1:_G1 + 1, :], vecs_ref[_BE1:_BE1 + 1, :])

    # ---- position-wise FFN: Linear -> ReLU -> Linear (whole token slab) -------
    h1 = jnp.dot(y.astype(jnp.bfloat16), w1_ref[...], preferred_element_type=f32)
    h1 = jnp.maximum(h1 + b1_ref[...], 0.0)
    h2 = jnp.dot(h1.astype(jnp.bfloat16), w2_ref[...], preferred_element_type=f32)
    h2 = h2 + vecs_ref[_B2:_B2 + 1, :]

    # ---- Add & LayerNorm (FFN sub-layer) ---------------------------------------
    out_ref[...] = _layer_norm(y + h2,
                               vecs_ref[_G2:_G2 + 1, :], vecs_ref[_BE2:_BE2 + 1, :])


def _num_tensorcores():
    """Best-effort TensorCore count (2 on v7x, 1 on v5e/v6e). Defaults to 1."""
    try:
        info = pltpu.get_tpu_info()
        for name in ("num_cores", "core_count", "num_tensorcores"):
            v = getattr(info, name, None)
            if v:
                return int(v)
    except Exception:
        pass
    return 1


def _choose_tb(batch, seq, target_rows=512, num_cores=None):
    """Batch elements per grid step.  Big token slabs amortise the ~0.35 us
    per-grid-step cost and keep the matmul M-dim tall; >=2 grid steps are only
    forced when a second TensorCore exists to consume them (v7x)."""
    if num_cores is None:
        num_cores = _num_tensorcores()
    tb = max(1, min(batch, target_rows // max(seq, 1)))
    while batch % tb:
        tb -= 1
    while num_cores > 1 and tb > 1 and batch // tb < num_cores:
        tb -= 1
        while batch % tb:
            tb -= 1
    return tb


def encoder_layer(x, p, tb=None, attn_map_dtype=jnp.bfloat16):
    B, S, D = x.shape
    assert D == D_MODEL and D_MODEL % N_HEADS == 0
    assert D_K % 8 == 0 and S % 8 == 0      # free head split / aligned row slices
    if tb is None:
        tb = _choose_tb(B, S)
    assert B % tb == 0
    R = tb * S
    bf16 = jnp.bfloat16
    scale = 1.0 / float(np.sqrt(D_K))

    # Pack Q|K|V into one transposed (3D, D) weight, fold the 1/sqrt(d_k) scale
    # into the Q rows, ship matmul weights as bf16 (f32 accumulation in-kernel).
    wqkv_t = jnp.concatenate(
        [p['wq'].T * scale, p['wk'].T, p['wv'].T], axis=0).astype(bf16)   # (3D, D)
    bqkv_t = jnp.concatenate(
        [p['bq'][0] * scale, p['bk'][0], p['bv'][0]], axis=0)[:, None]    # (3D, 1)
    # Pack the six per-channel vectors into one (6, D) input.
    vecs = jnp.concatenate(
        [p['bo'], p['g1'], p['be1'], p['b2'], p['g2'], p['be2']], axis=0)  # (6, D)

    x2d = x.reshape(B * S, D)            # 2-D row-major token slab

    def full(shape):
        return pl.BlockSpec(shape, lambda i: (0,) * len(shape))

    in_specs = [
        pl.BlockSpec((R, D), lambda i: (i, 0)),          # x rows for this block
        full((3 * D, D)), full((3 * D, 1)),              # packed QKV weight/bias
        full((D, D)),                                    # wo
        full((D, D_FF)), full((1, D_FF)),                # w1, b1
        full((D_FF, D)),                                 # w2
        full((6, D)),                                    # packed per-channel vecs
    ]
    out_specs = (
        pl.BlockSpec((R, D), lambda i: (i, 0)),                      # out rows
        pl.BlockSpec((tb, N_HEADS, S, S), lambda i: (i, 0, 0, 0)),   # attn maps
    )
    out_shape = (
        jax.ShapeDtypeStruct((B * S, D), jnp.float32),
        jax.ShapeDtypeStruct((B, N_HEADS, S, S), attn_map_dtype),
    )

    kernel = functools.partial(encoder_layer_kernel, tb=tb, seq=S)
    out2d, attn = pl.pallas_call(
        kernel,
        grid=(B // tb,),
        in_specs=in_specs,
        out_specs=out_specs,
        out_shape=out_shape,
        compiler_params=pltpu.CompilerParams(
            dimension_semantics=("parallel",),
            vmem_limit_bytes=_VMEM_LIMIT_BYTES),
    )(x2d, wqkv_t, bqkv_t, p['wo'].astype(bf16),
      p['w1'].astype(bf16), p['b1'], p['w2'].astype(bf16), vecs)
    return out2d.reshape(B, S, D), attn


def init_params(key):
    ks = jax.random.split(key, 6)

    def lin(k, fan_in, fan_out):
        kw, kb = jax.random.split(k)
        w = jax.random.normal(kw, (fan_in, fan_out), jnp.float32) / np.sqrt(fan_in)
        b = jax.random.normal(kb, (1, fan_out), jnp.float32) * 0.01
        return w, b

    wq, bq = lin(ks[0], D_MODEL, D_MODEL)
    wk, bk = lin(ks[1], D_MODEL, D_MODEL)
    wv, bv = lin(ks[2], D_MODEL, D_MODEL)
    wo, bo = lin(ks[3], D_MODEL, D_MODEL)
    w1, b1 = lin(ks[4], D_MODEL, D_FF)
    w2, b2 = lin(ks[5], D_FF, D_MODEL)
    ones = jnp.ones((1, D_MODEL), jnp.float32)
    zeros = jnp.zeros((1, D_MODEL), jnp.float32)
    return dict(wq=wq, bq=bq, wk=wk, bk=bk, wv=wv, bv=bv, wo=wo, bo=bo,
                g1=ones, be1=zeros, w1=w1, b1=b1, w2=w2, b2=b2,
                g2=ones, be2=zeros)


def encoder_layer_ref(x, p):
    """Pure-JAX f32 reference (same math as the PyTorch module)."""
    B, S, _ = x.shape
    d_k = D_MODEL // N_HEADS
    q = x @ p['wq'] + p['bq']
    k = x @ p['wk'] + p['bk']
    v = x @ p['wv'] + p['bv']

    def split(t):
        return t.reshape(B, S, N_HEADS, d_k).transpose(0, 2, 1, 3)

    qh, kh, vh = split(q), split(k), split(v)
    scores = jnp.einsum('bhqd,bhkd->bhqk', qh, kh) / jnp.sqrt(jnp.float32(d_k))
    attn = jax.nn.softmax(scores, axis=-1)
    ctx = jnp.einsum('bhqk,bhkd->bhqd', attn, vh)
    ctx = ctx.transpose(0, 2, 1, 3).reshape(B, S, D_MODEL)
    attn_out = ctx @ p['wo'] + p['bo']

    def ln(t, g, b):
        mu = t.mean(-1, keepdims=True)
        var = ((t - mu) ** 2).mean(-1, keepdims=True)
        return (t - mu) / jnp.sqrt(var + EPS) * g + b

    y = ln(x + attn_out, p['g1'], p['be1'])
    h1 = jnp.maximum(y @ p['w1'] + p['b1'], 0.0)
    out = ln(y + h1 @ p['w2'] + p['b2'], p['g2'], p['be2'])
    return out, attn


if __name__ == "__main__":
    B, S = 4, 8
    key = jax.random.PRNGKey(0)
    kx, kp = jax.random.split(key)
    x = jax.random.normal(kx, (B, S, D_MODEL), jnp.float32)
    params = init_params(kp)

    out, attn = encoder_layer(x, params)
    jax.block_until_ready((out, attn))

    ref_out, ref_attn = encoder_layer_ref(x, params)
    # bf16 MXU inputs (f32 accumulation), bf16 attention-map storage and the
    # approx EUP reciprocal -> tolerance looser than a pure-f32 comparison.
    np.testing.assert_allclose(np.asarray(out), np.asarray(ref_out),
                               rtol=3e-2, atol=3e-2)
    np.testing.assert_allclose(np.asarray(attn.astype(jnp.float32)),
                               np.asarray(ref_attn), rtol=3e-2, atol=3e-2)

    print("KERNEL_OK")
</pallas_src>

<mosaic_0001>
module attributes {stable_mosaic.version = 11 : i64} {
  func.func @encoder_layer_kernel(%arg0: i32, %arg1: memref<32x32xf32, #tpu.memory_space<vmem>>, %arg2: memref<96x32xbf16, #tpu.memory_space<vmem>>, %arg3: memref<96x1xf32, #tpu.memory_space<vmem>>, %arg4: memref<32x32xbf16, #tpu.memory_space<vmem>>, %arg5: memref<32x64xbf16, #tpu.memory_space<vmem>>, %arg6: memref<1x64xf32, #tpu.memory_space<vmem>>, %arg7: memref<64x32xbf16, #tpu.memory_space<vmem>>, %arg8: memref<6x32xf32, #tpu.memory_space<vmem>>, %arg9: memref<32x32xf32, #tpu.memory_space<vmem>>, %arg10: memref<4x4x8x8xbf16, #tpu.memory_space<vmem>>) attributes {dimension_semantics = [#tpu.dimension_semantics<parallel>], iteration_bounds = array<i64: 1>, scalar_prefetch = 0 : i64, scratch_operands = 0 : i64, tpu.core_type = #tpu.core_type<tc>, window_params = [{transform_indices = @transform_0, window_bounds = array<i64: 32, 32>}, {pipeline_mode = #tpu.pipeline_mode<synchronous>, transform_indices = @transform_1, window_bounds = array<i64: 96, 32>}, {pipeline_mode = #tpu.pipeline_mode<synchronous>, transform_indices = @transform_2, window_bounds = array<i64: 96, 1>}, {pipeline_mode = #tpu.pipeline_mode<synchronous>, transform_indices = @transform_3, window_bounds = array<i64: 32, 32>}, {pipeline_mode = #tpu.pipeline_mode<synchronous>, transform_indices = @transform_4, window_bounds = array<i64: 32, 64>}, {pipeline_mode = #tpu.pipeline_mode<synchronous>, transform_indices = @transform_5, window_bounds = array<i64: 1, 64>}, {pipeline_mode = #tpu.pipeline_mode<synchronous>, transform_indices = @transform_6, window_bounds = array<i64: 64, 32>}, {pipeline_mode = #tpu.pipeline_mode<synchronous>, transform_indices = @transform_7, window_bounds = array<i64: 6, 32>}, {transform_indices = @transform_8, window_bounds = array<i64: 32, 32>}, {transform_indices = @transform_9, window_bounds = array<i64: 4, 4, 8, 8>}]} {
    %c0_i32 = arith.constant 0 : i32
    %c8_i32 = arith.constant 8 : i32
    %0 = arith.muli %c0_i32, %c8_i32 : i32
    %1 = tpu.assume_multiple %0, 8 : i32
    %2 = arith.index_cast %1 : i32 to index
    %c0 = arith.constant 0 : index
    %3 = vector.load %arg1[%2, %c0] : memref<32x32xf32, #tpu.memory_space<vmem>>, vector<8x32xf32>
    %4 = arith.truncf %3 : vector<8x32xf32> to vector<8x32xbf16>
    %c0_0 = arith.constant 0 : index
    %c0_1 = arith.constant 0 : index
    %5 = vector.load %arg2[%c0_0, %c0_1] : memref<96x32xbf16, #tpu.memory_space<vmem>>, vector<96x32xbf16>
    %cst = arith.constant dense<0.000000e+00> : vector<96x8xf32>
    %6 = tpu.matmul %5, %4, %cst {dimension_numbers = #tpu.dot_dimension_numbers<[1], [1], [0], [0], [0, 0, 1, 0], [], []>} : vector<96x32xbf16>, vector<8x32xbf16>, vector<96x8xf32> -> vector<96x8xf32>
    %c0_2 = arith.constant 0 : index
    %c0_3 = arith.constant 0 : index
    %7 = vector.load %arg3[%c0_2, %c0_3] : memref<96x1xf32, #tpu.memory_space<vmem>>, vector<96x1xf32>
    %8 = vector.broadcast %7 : vector<96x1xf32> to vector<96x8xf32>
    %9 = arith.addf %6, %8 : vector<96x8xf32>
    %10 = vector.shape_cast %9 : vector<96x8xf32> to vector<12x8x8xf32>
    %11 = arith.truncf %10 : vector<12x8x8xf32> to vector<12x8x8xbf16>
    %12 = vector.extract_strided_slice %11 {offsets = [0, 0, 0], sizes = [4, 8, 8], strides = [1, 1, 1]} : vector<12x8x8xbf16> to vector<4x8x8xbf16>
    %13 = vector.extract_strided_slice %11 {offsets = [4, 0, 0], sizes = [4, 8, 8], strides = [1, 1, 1]} : vector<12x8x8xbf16> to vector<4x8x8xbf16>
    %14 = vector.extract_strided_slice %11 {offsets = [8, 0, 0], sizes = [4, 8, 8], strides = [1, 1, 1]} : vector<12x8x8xbf16> to vector<4x8x8xbf16>
    %cst_4 = arith.constant dense<0.000000e+00> : vector<4x8x8xf32>
    %15 = tpu.matmul %12, %13, %cst_4 {dimension_numbers = #tpu.dot_dimension_numbers<[1], [1], [2], [2], [0, 0, 0, 2, 1, 2], [0], [0]>} : vector<4x8x8xbf16>, vector<4x8x8xbf16>, vector<4x8x8xf32> -> vector<4x8x8xf32>
    %cst_5 = arith.constant dense<0xFF800000> : vector<4x8xf32>
    %16 = vector.multi_reduction <maximumf>, %15, %cst_5 [2] : vector<4x8x8xf32> to vector<4x8xf32>
    %17 = vector.shape_cast %16 : vector<4x8xf32> to vector<4x8x1xf32>
    %18 = vector.broadcast %17 : vector<4x8x1xf32> to vector<4x8x8xf32>
    %19 = arith.subf %15, %18 : vector<4x8x8xf32>
    %20 = math.exp %19 : vector<4x8x8xf32>
    %cst_6 = arith.constant dense<0.000000e+00> : vector<4x8xf32>
    %21 = vector.multi_reduction <add>, %20, %cst_6 [2] : vector<4x8x8xf32> to vector<4x8xf32>
    %22 = vector.shape_cast %21 : vector<4x8xf32> to vector<4x8x1xf32>
    %23 = tpu.reciprocal %22 {approx = true} : vector<4x8x1xf32> -> vector<4x8x1xf32>
    %24 = vector.broadcast %23 : vector<4x8x1xf32> to vector<4x8x8xf32>
    %25 = arith.mulf %20, %24 : vector<4x8x8xf32>
    %26 = arith.truncf %25 : vector<4x8x8xf32> to vector<4x8x8xbf16>
    %27 = arith.index_cast %c0_i32 : i32 to index
    %c0_7 = arith.constant 0 : index
    %c0_8 = arith.constant 0 : index
    %c0_9 = arith.constant 0 : index
    %28 = vector.load %arg10[%27, %c0_7, %c0_8, %c0_9] : memref<4x4x8x8xbf16, #tpu.memory_space<vmem>>, vector<1x4x8x8xbf16>
    %29 = vector.shape_cast %28 : vector<1x4x8x8xbf16> to vector<4x8x8xbf16>
    %30 = vector.shape_cast %26 : vector<4x8x8xbf16> to vector<1x4x8x8xbf16>
    tpu.vector_store %arg10[%27, %c0_7, %c0_8, %c0_9], %30 {strides = array<i32>} : memref<4x4x8x8xbf16, #tpu.memory_space<vmem>>, vector<1x4x8x8xbf16>,
    %31 = arith.truncf %25 : vector<4x8x8xf32> to vector<4x8x8xbf16>
    %cst_10 = arith.constant dense<0.000000e+00> : vector<4x8x8xf32>
    %32 = tpu.matmul %14, %31, %cst_10 {dimension_numbers = #tpu.dot_dimension_numbers<[2], [2], [1], [1], [0, 0, 0, 1, 1, 1], [0], [0]>} : vector<4x8x8xbf16>, vector<4x8x8xbf16>, vector<4x8x8xf32> -> vector<4x8x8xf32>
    %33 = vector.shape_cast %32 : vector<4x8x8xf32> to vector<32x8xf32>
    %34 = arith.truncf %33 : vector<32x8xf32> to vector<32x8xbf16>
    %c0_11 = arith.constant 0 : index
    %c0_12 = arith.constant 0 : index
    %35 = vector.load %arg4[%c0_11, %c0_12] : memref<32x32xbf16, #tpu.memory_space<vmem>>, vector<32x32xbf16>
    %cst_13 = arith.constant dense<0.000000e+00> : vector<8x32xf32>
    %36 = tpu.matmul %34, %35, %cst_13 {dimension_numbers = #tpu.dot_dimension_numbers<[0], [0], [1], [1], [0, 1, 1, 1], [], []>} : vector<32x8xbf16>, vector<32x32xbf16>, vector<8x32xf32> -> vector<8x32xf32>
    %37 = arith.index_cast %1 : i32 to index
    %c0_14 = arith.constant 0 : index
    %38 = vector.load %arg9[%37, %c0_14] : memref<32x32xf32, #tpu.memory_space<vmem>>, vector<8x32xf32>
    tpu.vector_store %arg9[%37, %c0_14], %36 {strides = array<i32>} : memref<32x32xf32, #tpu.memory_space<vmem>>, vector<8x32xf32>,
    %c1_i32 = arith.constant 1 : i32
    %c8_i32_15 = arith.constant 8 : i32
    %39 = arith.muli %c1_i32, %c8_i32_15 : i32
    %40 = tpu.assume_multiple %39, 8 : i32
    %41 = arith.index_cast %40 : i32 to index
    %c0_16 = arith.constant 0 : index
    %42 = vector.load %arg1[%41, %c0_16] : memref<32x32xf32, #tpu.memory_space<vmem>>, vector<8x32xf32>
    %43 = arith.truncf %42 : vector<8x32xf32> to vector<8x32xbf16>
    %c0_17 = arith.constant 0 : index
    %c0_18 = arith.constant 0 : index
    %44 = vector.load %arg2[%c0_17, %c0_18] : memref<96x32xbf16, #tpu.memory_space<vmem>>, vector<96x32xbf16>
    %cst_19 = arith.constant dense<0.000000e+00> : vector<96x8xf32>
    %45 = tpu.matmul %44, %43, %cst_19 {dimension_numbers = #tpu.dot_dimension_numbers<[1], [1], [0], [0], [0, 0, 1, 0], [], []>} : vector<96x32xbf16>, vector<8x32xbf16>, vector<96x8xf32> -> vector<96x8xf32>
    %c0_20 = arith.constant 0 : index
    %c0_21 = arith.constant 0 : index
    %46 = vector.load %arg3[%c0_20, %c0_21] : memref<96x1xf32, #tpu.memory_space<vmem>>, vector<96x1xf32>
    %47 = vector.broadcast %46 : vector<96x1xf32> to vector<96x8xf32>
    %48 = arith.addf %45, %47 : vector<96x8xf32>
    %49 = vector.shape_cast %48 : vector<96x8xf32> to vector<12x8x8xf32>
    %50 = arith.truncf %49 : vector<12x8x8xf32> to vector<12x8x8xbf16>
    %51 = vector.extract_strided_slice %50 {offsets = [0, 0, 0], sizes = [4, 8, 8], strides = [1, 1, 1]} : vector<12x8x8xbf16> to vector<4x8x8xbf16>
    %52 = vector.extract_strided_slice %50 {offsets = [4, 0, 0], sizes = [4, 8, 8], strides = [1, 1, 1]} : vector<12x8x8xbf16> to vector<4x8x8xbf16>
    %53 = vector.extract_strided_slice %50 {offsets = [8, 0, 0], sizes = [4, 8, 8], strides = [1, 1, 1]} : vector<12x8x8xbf16> to vector<4x8x8xbf16>
    %cst_22 = arith.constant dense<0.000000e+00> : vector<4x8x8xf32>
    %54 = tpu.matmul %51, %52, %cst_22 {dimension_numbers = #tpu.dot_dimension_numbers<[1], [1], [2], [2], [0, 0, 0, 2, 1, 2], [0], [0]>} : vector<4x8x8xbf16>, vector<4x8x8xbf16>, vector<4x8x8xf32> -> vector<4x8x8xf32>
    %cst_23 = arith.constant dense<0xFF800000> : vector<4x8xf32>
    %55 = vector.multi_reduction <maximumf>, %54, %cst_23 [2] : vector<4x8x8xf32> to vector<4x8xf32>
    %56 = vector.shape_cast %55 : vector<4x8xf32> to vector<4x8x1xf32>
    %57 = vector.broadcast %56 : vector<4x8x1xf32> to vector<4x8x8xf32>
    %58 = arith.subf %54, %57 : vector<4x8x8xf32>
    %59 = math.exp %58 : vector<4x8x8xf32>
    %cst_24 = arith.constant dense<0.000000e+00> : vector<4x8xf32>
    %60 = vector.multi_reduction <add>, %59, %cst_24 [2] : vector<4x8x8xf32> to vector<4x8xf32>
    %61 = vector.shape_cast %60 : vector<4x8xf32> to vector<4x8x1xf32>
    %62 = tpu.reciprocal %61 {approx = true} : vector<4x8x1xf32> -> vector<4x8x1xf32>
    %63 = vector.broadcast %62 : vector<4x8x1xf32> to vector<4x8x8xf32>
    %64 = arith.mulf %59, %63 : vector<4x8x8xf32>
    %65 = arith.truncf %64 : vector<4x8x8xf32> to vector<4x8x8xbf16>
    %66 = arith.index_cast %c1_i32 : i32 to index
    %c0_25 = arith.constant 0 : index
    %c0_26 = arith.constant 0 : index
    %c0_27 = arith.constant 0 : index
    %67 = vector.load %arg10[%66, %c0_25, %c0_26, %c0_27] : memref<4x4x8x8xbf16, #tpu.memory_space<vmem>>, vector<1x4x8x8xbf16>
    %68 = vector.shape_cast %67 : vector<1x4x8x8xbf16> to vector<4x8x8xbf16>
    %69 = vector.shape_cast %65 : vector<4x8x8xbf16> to vector<1x4x8x8xbf16>
    tpu.vector_store %arg10[%66, %c0_25, %c0_26, %c0_27], %69 {strides = array<i32>} : memref<4x4x8x8xbf16, #tpu.memory_space<vmem>>, vector<1x4x8x8xbf16>,
    %70 = arith.truncf %64 : vector<4x8x8xf32> to vector<4x8x8xbf16>
    %cst_28 = arith.constant dense<0.000000e+00> : vector<4x8x8xf32>
    %71 = tpu.matmul %53, %70, %cst_28 {dimension_numbers = #tpu.dot_dimension_numbers<[2], [2], [1], [1], [0, 0, 0, 1, 1, 1], [0], [0]>} : vector<4x8x8xbf16>, vector<4x8x8xbf16>, vector<4x8x8xf32> -> vector<4x8x8xf32>
    %72 = vector.shape_cast %71 : vector<4x8x8xf32> to vector<32x8xf32>
    %73 = arith.truncf %72 : vector<32x8xf32> to vector<32x8xbf16>
    %c0_29 = arith.constant 0 : index
    %c0_30 = arith.constant 0 : index
    %74 = vector.load %arg4[%c0_29, %c0_30] : memref<32x32xbf16, #tpu.memory_space<vmem>>, vector<32x32xbf16>
    %cst_31 = arith.constant dense<0.000000e+00> : vector<8x32xf32>
    %75 = tpu.matmul %73, %74, %cst_31 {dimension_numbers = #tpu.dot_dimension_numbers<[0], [0], [1], [1], [0, 1, 1, 1], [], []>} : vector<32x8xbf16>, vector<32x32xbf16>, vector<8x32xf32> -> vector<8x32xf32>
    %76 = arith.index_cast %40 : i32 to index
    %c0_32 = arith.constant 0 : index
    %77 = vector.load %arg9[%76, %c0_32] : memref<32x32xf32, #tpu.memory_space<vmem>>, vector<8x32xf32>
    tpu.vector_store %arg9[%76, %c0_32], %75 {strides = array<i32>} : memref<32x32xf32, #tpu.memory_space<vmem>>, vector<8x32xf32>,
    %c2_i32 = arith.constant 2 : i32
    %c8_i32_33 = arith.constant 8 : i32
    %78 = arith.muli %c2_i32, %c8_i32_33 : i32
    %79 = tpu.assume_multiple %78, 8 : i32
    %80 = arith.index_cast %79 : i32 to index
    %c0_34 = arith.constant 0 : index
    %81 = vector.load %arg1[%80, %c0_34] : memref<32x32xf32, #tpu.memory_space<vmem>>, vector<8x32xf32>
    %82 = arith.truncf %81 : vector<8x32xf32> to vector<8x32xbf16>
    %c0_35 = arith.constant 0 : index
    %c0_36 = arith.constant 0 : index
    %83 = vector.load %arg2[%c0_35, %c0_36] : memref<96x32xbf16, #tpu.memory_space<vmem>>, vector<96x32xbf16>
    %cst_37 = arith.constant dense<0.000000e+00> : vector<96x8xf32>
    %84 = tpu.matmul %83, %82, %cst_37 {dimension_numbers = #tpu.dot_dimension_numbers<[1], [1], [0], [0], [0, 0, 1, 0], [], []>} : vector<96x32xbf16>, vector<8x32xbf16>, vector<96x8xf32> -> vector<96x8xf32>
    %c0_38 = arith.constant 0 : index
    %c0_39 = arith.constant 0 : index
    %85 = vector.load %arg3[%c0_38, %c0_39] : memref<96x1xf32, #tpu.memory_space<vmem>>, vector<96x1xf32>
    %86 = vector.broadcast %85 : vector<96x1xf32> to vector<96x8xf32>
    %87 = arith.addf %84, %86 : vector<96x8xf32>
    %88 = vector.shape_cast %87 : vector<96x8xf32> to vector<12x8x8xf32>
    %89 = arith.truncf %88 : vector<12x8x8xf32> to vector<12x8x8xbf16>
    %90 = vector.extract_strided_slice %89 {offsets = [0, 0, 0], sizes = [4, 8, 8], strides = [1, 1, 1]} : vector<12x8x8xbf16> to vector<4x8x8xbf16>
    %91 = vector.extract_strided_slice %89 {offsets = [4, 0, 0], sizes = [4, 8, 8], strides = [1, 1, 1]} : vector<12x8x8xbf16> to vector<4x8x8xbf16>
    %92 = vector.extract_strided_slice %89 {offsets = [8, 0, 0], sizes = [4, 8, 8], strides = [1, 1, 1]} : vector<12x8x8xbf16> to vector<4x8x8xbf16>
    %cst_40 = arith.constant dense<0.000000e+00> : vector<4x8x8xf32>
    %93 = tpu.matmul %90, %91, %cst_40 {dimension_numbers = #tpu.dot_dimension_numbers<[1], [1], [2], [2], [0, 0, 0, 2, 1, 2], [0], [0]>} : vector<4x8x8xbf16>, vector<4x8x8xbf16>, vector<4x8x8xf32> -> vector<4x8x8xf32>
    %cst_41 = arith.constant dense<0xFF800000> : vector<4x8xf32>
    %94 = vector.multi_reduction <maximumf>, %93, %cst_41 [2] : vector<4x8x8xf32> to vector<4x8xf32>
    %95 = vector.shape_cast %94 : vector<4x8xf32> to vector<4x8x1xf32>
    %96 = vector.broadcast %95 : vector<4x8x1xf32> to vector<4x8x8xf32>
    %97 = arith.subf %93, %96 : vector<4x8x8xf32>
    %98 = math.exp %97 : vector<4x8x8xf32>
    %cst_42 = arith.constant dense<0.000000e+00> : vector<4x8xf32>
    %99 = vector.multi_reduction <add>, %98, %cst_42 [2] : vector<4x8x8xf32> to vector<4x8xf32>
    %100 = vector.shape_cast %99 : vector<4x8xf32> to vector<4x8x1xf32>
    %101 = tpu.reciprocal %100 {approx = true} : vector<4x8x1xf32> -> vector<4x8x1xf32>
    %102 = vector.broadcast %101 : vector<4x8x1xf32> to vector<4x8x8xf32>
    %103 = arith.mulf %98, %102 : vector<4x8x8xf32>
    %104 = arith.truncf %103 : vector<4x8x8xf32> to vector<4x8x8xbf16>
    %105 = arith.index_cast %c2_i32 : i32 to index
    %c0_43 = arith.constant 0 : index
    %c0_44 = arith.constant 0 : index
    %c0_45 = arith.constant 0 : index
    %106 = vector.load %arg10[%105, %c0_43, %c0_44, %c0_45] : memref<4x4x8x8xbf16, #tpu.memory_space<vmem>>, vector<1x4x8x8xbf16>
    %107 = vector.shape_cast %106 : vector<1x4x8x8xbf16> to vector<4x8x8xbf16>
    %108 = vector.shape_cast %104 : vector<4x8x8xbf16> to vector<1x4x8x8xbf16>
    tpu.vector_store %arg10[%105, %c0_43, %c0_44, %c0_45], %108 {strides = array<i32>} : memref<4x4x8x8xbf16, #tpu.memory_space<vmem>>, vector<1x4x8x8xbf16>,
    %109 = arith.truncf %103 : vector<4x8x8xf32> to vector<4x8x8xbf16>
    %cst_46 = arith.constant dense<0.000000e+00> : vector<4x8x8xf32>
    %110 = tpu.matmul %92, %109, %cst_46 {dimension_numbers = #tpu.dot_dimension_numbers<[2], [2], [1], [1], [0, 0, 0, 1, 1, 1], [0], [0]>} : vector<4x8x8xbf16>, vector<4x8x8xbf16>, vector<4x8x8xf32> -> vector<4x8x8xf32>
    %111 = vector.shape_cast %110 : vector<4x8x8xf32> to vector<32x8xf32>
    %112 = arith.truncf %111 : vector<32x8xf32> to vector<32x8xbf16>
    %c0_47 = arith.constant 0 : index
    %c0_48 = arith.constant 0 : index
    %113 = vector.load %arg4[%c0_47, %c0_48] : memref<32x32xbf16, #tpu.memory_space<vmem>>, vector<32x32xbf16>
    %cst_49 = arith.constant dense<0.000000e+00> : vector<8x32xf32>
    %114 = tpu.matmul %112, %113, %cst_49 {dimension_numbers = #tpu.dot_dimension_numbers<[0], [0], [1], [1], [0, 1, 1, 1], [], []>} : vector<32x8xbf16>, vector<32x32xbf16>, vector<8x32xf32> -> vector<8x32xf32>
    %115 = arith.index_cast %79 : i32 to index
    %c0_50 = arith.constant 0 : index
    %116 = vector.load %arg9[%115, %c0_50] : memref<32x32xf32, #tpu.memory_space<vmem>>, vector<8x32xf32>
    tpu.vector_store %arg9[%115, %c0_50], %114 {strides = array<i32>} : memref<32x32xf32, #tpu.memory_space<vmem>>, vector<8x32xf32>,
    %c3_i32 = arith.constant 3 : i32
    %c8_i32_51 = arith.constant 8 : i32
    %117 = arith.muli %c3_i32, %c8_i32_51 : i32
    %118 = tpu.assume_multiple %117, 8 : i32
    %119 = arith.index_cast %118 : i32 to index
    %c0_52 = arith.constant 0 : index
    %120 = vector.load %arg1[%119, %c0_52] : memref<32x32xf32, #tpu.memory_space<vmem>>, vector<8x32xf32>
    %121 = arith.truncf %120 : vector<8x32xf32> to vector<8x32xbf16>
    %c0_53 = arith.constant 0 : index
    %c0_54 = arith.constant 0 : index
    %122 = vector.load %arg2[%c0_53, %c0_54] : memref<96x32xbf16, #tpu.memory_space<vmem>>, vector<96x32xbf16>
    %cst_55 = arith.constant dense<0.000000e+00> : vector<96x8xf32>
    %123 = tpu.matmul %122, %121, %cst_55 {dimension_numbers = #tpu.dot_dimension_numbers<[1], [1], [0], [0], [0, 0, 1, 0], [], []>} : vector<96x32xbf16>, vector<8x32xbf16>, vector<96x8xf32> -> vector<96x8xf32>
    %c0_56 = arith.constant 0 : index
    %c0_57 = arith.constant 0 : index
    %124 = vector.load %arg3[%c0_56, %c0_57] : memref<96x1xf32, #tpu.memory_space<vmem>>, vector<96x1xf32>
    %125 = vector.broadcast %124 : vector<96x1xf32> to vector<96x8xf32>
    %126 = arith.addf %123, %125 : vector<96x8xf32>
    %127 = vector.shape_cast %126 : vector<96x8xf32> to vector<12x8x8xf32>
    %128 = arith.truncf %127 : vector<12x8x8xf32> to vector<12x8x8xbf16>
    %129 = vector.extract_strided_slice %128 {offsets = [0, 0, 0], sizes = [4, 8, 8], strides = [1, 1, 1]} : vector<12x8x8xbf16> to vector<4x8x8xbf16>
    %130 = vector.extract_strided_slice %128 {offsets = [4, 0, 0], sizes = [4, 8, 8], strides = [1, 1, 1]} : vector<12x8x8xbf16> to vector<4x8x8xbf16>
    %131 = vector.extract_strided_slice %128 {offsets = [8, 0, 0], sizes = [4, 8, 8], strides = [1, 1, 1]} : vector<12x8x8xbf16> to vector<4x8x8xbf16>
    %cst_58 = arith.constant dense<0.000000e+00> : vector<4x8x8xf32>
    %132 = tpu.matmul %129, %130, %cst_58 {dimension_numbers = #tpu.dot_dimension_numbers<[1], [1], [2], [2], [0, 0, 0, 2, 1, 2], [0], [0]>} : vector<4x8x8xbf16>, vector<4x8x8xbf16>, vector<4x8x8xf32> -> vector<4x8x8xf32>
    %cst_59 = arith.constant dense<0xFF800000> : vector<4x8xf32>
    %133 = vector.multi_reduction <maximumf>, %132, %cst_59 [2] : vector<4x8x8xf32> to vector<4x8xf32>
    %134 = vector.shape_cast %133 : vector<4x8xf32> to vector<4x8x1xf32>
    %135 = vector.broadcast %134 : vector<4x8x1xf32> to vector<4x8x8xf32>
    %136 = arith.subf %132, %135 : vector<4x8x8xf32>
    %137 = math.exp %136 : vector<4x8x8xf32>
    %cst_60 = arith.constant dense<0.000000e+00> : vector<4x8xf32>
    %138 = vector.multi_reduction <add>, %137, %cst_60 [2] : vector<4x8x8xf32> to vector<4x8xf32>
    %139 = vector.shape_cast %138 : vector<4x8xf32> to vector<4x8x1xf32>
    %140 = tpu.reciprocal %139 {approx = true} : vector<4x8x1xf32> -> vector<4x8x1xf32>
    %141 = vector.broadcast %140 : vector<4x8x1xf32> to vector<4x8x8xf32>
    %142 = arith.mulf %137, %141 : vector<4x8x8xf32>
    %143 = arith.truncf %142 : vector<4x8x8xf32> to vector<4x8x8xbf16>
    %144 = arith.index_cast %c3_i32 : i32 to index
    %c0_61 = arith.constant 0 : index
    %c0_62 = arith.constant 0 : index
    %c0_63 = arith.constant 0 : index
    %145 = vector.load %arg10[%144, %c0_61, %c0_62, %c0_63] : memref<4x4x8x8xbf16, #tpu.memory_space<vmem>>, vector<1x4x8x8xbf16>
    %146 = vector.shape_cast %145 : vector<1x4x8x8xbf16> to vector<4x8x8xbf16>
    %147 = vector.shape_cast %143 : vector<4x8x8xbf16> to vector<1x4x8x8xbf16>
    tpu.vector_store %arg10[%144, %c0_61, %c0_62, %c0_63], %147 {strides = array<i32>} : memref<4x4x8x8xbf16, #tpu.memory_space<vmem>>, vector<1x4x8x8xbf16>,
    %148 = arith.truncf %142 : vector<4x8x8xf32> to vector<4x8x8xbf16>
    %cst_64 = arith.constant dense<0.000000e+00> : vector<4x8x8xf32>
    %149 = tpu.matmul %131, %148, %cst_64 {dimension_numbers = #tpu.dot_dimension_numbers<[2], [2], [1], [1], [0, 0, 0, 1, 1, 1], [0], [0]>} : vector<4x8x8xbf16>, vector<4x8x8xbf16>, vector<4x8x8xf32> -> vector<4x8x8xf32>
    %150 = vector.shape_cast %149 : vector<4x8x8xf32> to vector<32x8xf32>
    %151 = arith.truncf %150 : vector<32x8xf32> to vector<32x8xbf16>
    %c0_65 = arith.constant 0 : index
    %c0_66 = arith.constant 0 : index
    %152 = vector.load %arg4[%c0_65, %c0_66] : memref<32x32xbf16, #tpu.memory_space<vmem>>, vector<32x32xbf16>
    %cst_67 = arith.constant dense<0.000000e+00> : vector<8x32xf32>
    %153 = tpu.matmul %151, %152, %cst_67 {dimension_numbers = #tpu.dot_dimension_numbers<[0], [0], [1], [1], [0, 1, 1, 1], [], []>} : vector<32x8xbf16>, vector<32x32xbf16>, vector<8x32xf32> -> vector<8x32xf32>
    %154 = arith.index_cast %118 : i32 to index
    %c0_68 = arith.constant 0 : index
    %155 = vector.load %arg9[%154, %c0_68] : memref<32x32xf32, #tpu.memory_space<vmem>>, vector<8x32xf32>
    tpu.vector_store %arg9[%154, %c0_68], %153 {strides = array<i32>} : memref<32x32xf32, #tpu.memory_space<vmem>>, vector<8x32xf32>,
    %c4_i32 = arith.constant 4 : i32
    %c0_69 = arith.constant 0 : index
    %c0_70 = arith.constant 0 : index
    %156 = vector.load %arg1[%c0_69, %c0_70] : memref<32x32xf32, #tpu.memory_space<vmem>>, vector<32x32xf32>
    %c0_71 = arith.constant 0 : index
    %c0_72 = arith.constant 0 : index
    %157 = vector.load %arg9[%c0_71, %c0_72] : memref<32x32xf32, #tpu.memory_space<vmem>>, vector<32x32xf32>
    %c0_73 = arith.constant 0 : index
    %c0_74 = arith.constant 0 : index
    %158 = vector.load %arg8[%c0_73, %c0_74] : memref<6x32xf32, #tpu.memory_space<vmem>>, vector<1x32xf32>
    %159 = vector.broadcast %158 : vector<1x32xf32> to vector<32x32xf32>
    %160 = arith.addf %157, %159 : vector<32x32xf32>
    %161 = arith.addf %156, %160 : vector<32x32xf32>
    %c1 = arith.constant 1 : index
    %c0_75 = arith.constant 0 : index
    %162 = vector.load %arg8[%c1, %c0_75] : memref<6x32xf32, #tpu.memory_space<vmem>>, vector<1x32xf32>
    %c2 = arith.constant 2 : index
    %c0_76 = arith.constant 0 : index
    %163 = vector.load %arg8[%c2, %c0_76] : memref<6x32xf32, #tpu.memory_space<vmem>>, vector<1x32xf32>
    %cst_77 = arith.constant dense<0.000000e+00> : vector<32xf32>
    %164 = vector.multi_reduction <add>, %161, %cst_77 [1] : vector<32x32xf32> to vector<32xf32>
    %165 = vector.shape_cast %164 : vector<32xf32> to vector<32x1xf32>
    %cst_78 = arith.constant 3.200000e+01 : f32
    %166 = vector.broadcast %cst_78 : f32 to vector<32x1xf32>
    %167 = arith.divf %165, %166 : vector<32x1xf32>
    %168 = vector.broadcast %167 : vector<32x1xf32> to vector<32x32xf32>
    %169 = arith.subf %161, %168 : vector<32x32xf32>
    %170 = arith.mulf %169, %169 : vector<32x32xf32>
    %cst_79 = arith.constant dense<0.000000e+00> : vector<32xf32>
    %171 = vector.multi_reduction <add>, %170, %cst_79 [1] : vector<32x32xf32> to vector<32xf32>
    %172 = vector.shape_cast %171 : vector<32xf32> to vector<32x1xf32>
    %cst_80 = arith.constant 3.200000e+01 : f32
    %173 = vector.broadcast %cst_80 : f32 to vector<32x1xf32>
    %174 = arith.divf %172, %173 : vector<32x1xf32>
    %175 = vector.broadcast %167 : vector<32x1xf32> to vector<32x32xf32>
    %176 = arith.subf %161, %175 : vector<32x32xf32>
    %cst_81 = arith.constant 9.99999974E-6 : f32
    %177 = vector.broadcast %cst_81 : f32 to vector<32x1xf32>
    %178 = arith.addf %174, %177 : vector<32x1xf32>
    %179 = math.rsqrt %178 : vector<32x1xf32>
    %180 = vector.broadcast %179 : vector<32x1xf32> to vector<32x32xf32>
    %181 = arith.mulf %176, %180 : vector<32x32xf32>
    %182 = vector.broadcast %162 : vector<1x32xf32> to vector<32x32xf32>
    %183 = arith.mulf %181, %182 : vector<32x32xf32>
    %184 = vector.broadcast %163 : vector<1x32xf32> to vector<32x32xf32>
    %185 = arith.addf %183, %184 : vector<32x32xf32>
    %186 = arith.truncf %185 : vector<32x32xf32> to vector<32x32xbf16>
    %c0_82 = arith.constant 0 : index
    %c0_83 = arith.constant 0 : index
    %187 = vector.load %arg5[%c0_82, %c0_83] : memref<32x64xbf16, #tpu.memory_space<vmem>>, vector<32x64xbf16>
    %cst_84 = arith.constant dense<0.000000e+00> : vector<32x64xf32>
    %188 = tpu.matmul %186, %187, %cst_84 {dimension_numbers = #tpu.dot_dimension_numbers<[1], [0], [0], [1], [0, 0, 1, 1], [], []>} : vector<32x32xbf16>, vector<32x64xbf16>, vector<32x64xf32> -> vector<32x64xf32>
    %c0_85 = arith.constant 0 : index
    %c0_86 = arith.constant 0 : index
    %189 = vector.load %arg6[%c0_85, %c0_86] : memref<1x64xf32, #tpu.memory_space<vmem>>, vector<1x64xf32>
    %190 = vector.broadcast %189 : vector<1x64xf32> to vector<32x64xf32>
    %191 = arith.addf %188, %190 : vector<32x64xf32>
    %cst_87 = arith.constant 0.000000e+00 : f32
    %192 = vector.broadcast %cst_87 : f32 to vector<32x64xf32>
    %193 = arith.maximumf %191, %192 : vector<32x64xf32>
    %194 = arith.truncf %193 : vector<32x64xf32> to vector<32x64xbf16>
    %c0_88 = arith.constant 0 : index
    %c0_89 = arith.constant 0 : index
    %195 = vector.load %arg7[%c0_88, %c0_89] : memref<64x32xbf16, #tpu.memory_space<vmem>>, vector<64x32xbf16>
    %cst_90 = arith.constant dense<0.000000e+00> : vector<32x32xf32>
    %196 = tpu.matmul %194, %195, %cst_90 {dimension_numbers = #tpu.dot_dimension_numbers<[1], [0], [0], [1], [0, 0, 1, 1], [], []>} : vector<32x64xbf16>, vector<64x32xbf16>, vector<32x32xf32> -> vector<32x32xf32>
    %c3 = arith.constant 3 : index
    %c0_91 = arith.constant 0 : index
    %197 = vector.load %arg8[%c3, %c0_91] : memref<6x32xf32, #tpu.memory_space<vmem>>, vector<1x32xf32>
    %198 = vector.broadcast %197 : vector<1x32xf32> to vector<32x32xf32>
    %199 = arith.addf %196, %198 : vector<32x32xf32>
    %200 = arith.addf %185, %199 : vector<32x32xf32>
    %c4 = arith.constant 4 : index
    %c0_92 = arith.constant 0 : index
    %201 = vector.load %arg8[%c4, %c0_92] : memref<6x32xf32, #tpu.memory_space<vmem>>, vector<1x32xf32>
    %c5 = arith.constant 5 : index
    %c0_93 = arith.constant 0 : index
    %202 = vector.load %arg8[%c5, %c0_93] : memref<6x32xf32, #tpu.memory_space<vmem>>, vector<1x32xf32>
    %cst_94 = arith.constant dense<0.000000e+00> : vector<32xf32>
    %203 = vector.multi_reduction <add>, %200, %cst_94 [1] : vector<32x32xf32> to vector<32xf32>
    %204 = vector.shape_cast %203 : vector<32xf32> to vector<32x1xf32>
    %cst_95 = arith.constant 3.200000e+01 : f32
    %205 = vector.broadcast %cst_95 : f32 to vector<32x1xf32>
    %206 = arith.divf %204, %205 : vector<32x1xf32>
    %207 = vector.broadcast %206 : vector<32x1xf32> to vector<32x32xf32>
    %208 = arith.subf %200, %207 : vector<32x32xf32>
    %209 = arith.mulf %208, %208 : vector<32x32xf32>
    %cst_96 = arith.constant dense<0.000000e+00> : vector<32xf32>
    %210 = vector.multi_reduction <add>, %209, %cst_96 [1] : vector<32x32xf32> to vector<32xf32>
    %211 = vector.shape_cast %210 : vector<32xf32> to vector<32x1xf32>
    %cst_97 = arith.constant 3.200000e+01 : f32
    %212 = vector.broadcast %cst_97 : f32 to vector<32x1xf32>
    %213 = arith.divf %211, %212 : vector<32x1xf32>
    %214 = vector.broadcast %206 : vector<32x1xf32> to vector<32x32xf32>
    %215 = arith.subf %200, %214 : vector<32x32xf32>
    %cst_98 = arith.constant 9.99999974E-6 : f32
    %216 = vector.broadcast %cst_98 : f32 to vector<32x1xf32>
    %217 = arith.addf %213, %216 : vector<32x1xf32>
    %218 = math.rsqrt %217 : vector<32x1xf32>
    %219 = vector.broadcast %218 : vector<32x1xf32> to vector<32x32xf32>
    %220 = arith.mulf %215, %219 : vector<32x32xf32>
    %221 = vector.broadcast %201 : vector<1x32xf32> to vector<32x32xf32>
    %222 = arith.mulf %220, %221 : vector<32x32xf32>
    %223 = vector.broadcast %202 : vector<1x32xf32> to vector<32x32xf32>
    %224 = arith.addf %222, %223 : vector<32x32xf32>
    %c0_99 = arith.constant 0 : index
    %c0_100 = arith.constant 0 : index
    %225 = vector.load %arg9[%c0_99, %c0_100] : memref<32x32xf32, #tpu.memory_space<vmem>>, vector<32x32xf32>
    tpu.vector_store %arg9[%c0_99, %c0_100], %224 {strides = array<i32>} : memref<32x32xf32, #tpu.memory_space<vmem>>, vector<32x32xf32>,
    return
  }
  func.func @transform_0(%arg0: i32) -> (i32, i32) {
    %c0_i32 = arith.constant 0 : i32
    %c0_i32_0 = arith.constant 0 : i32
    return %arg0, %c0_i32 : i32, i32
  }
  func.func @transform_1(%arg0: i32) -> (i32, i32) {
    %c0_i32 = arith.constant 0 : i32
    %c0_i32_0 = arith.constant 0 : i32
    %c0_i32_1 = arith.constant 0 : i32
    return %c0_i32, %c0_i32_0 : i32, i32
  }
  func.func @transform_2(%arg0: i32) -> (i32, i32) {
    %c0_i32 = arith.constant 0 : i32
    %c0_i32_0 = arith.constant 0 : i32
    %c0_i32_1 = arith.constant 0 : i32
    return %c0_i32, %c0_i32_0 : i32, i32
  }
  func.func @transform_3(%arg0: i32) -> (i32, i32) {
    %c0_i32 = arith.constant 0 : i32
    %c0_i32_0 = arith.constant 0 : i32
    %c0_i32_1 = arith.constant 0 : i32
    return %c0_i32, %c0_i32_0 : i32, i32
  }
  func.func @transform_4(%arg0: i32) -> (i32, i32) {
    %c0_i32 = arith.constant 0 : i32
    %c0_i32_0 = arith.constant 0 : i32
    %c0_i32_1 = arith.constant 0 : i32
    return %c0_i32, %c0_i32_0 : i32, i32
  }
  func.func @transform_5(%arg0: i32) -> (i32, i32) {
    %c0_i32 = arith.constant 0 : i32
    %c0_i32_0 = arith.constant 0 : i32
    %c0_i32_1 = arith.constant 0 : i32
    return %c0_i32, %c0_i32_0 : i32, i32
  }
  func.func @transform_6(%arg0: i32) -> (i32, i32) {
    %c0_i32 = arith.constant 0 : i32
    %c0_i32_0 = arith.constant 0 : i32
    %c0_i32_1 = arith.constant 0 : i32
    return %c0_i32, %c0_i32_0 : i32, i32
  }
  func.func @transform_7(%arg0: i32) -> (i32, i32) {
    %c0_i32 = arith.constant 0 : i32
    %c0_i32_0 = arith.constant 0 : i32
    %c0_i32_1 = arith.constant 0 : i32
    return %c0_i32, %c0_i32_0 : i32, i32
  }
  func.func @transform_8(%arg0: i32) -> (i32, i32) {
    %c0_i32 = arith.constant 0 : i32
    %c0_i32_0 = arith.constant 0 : i32
    return %arg0, %c0_i32 : i32, i32
  }
  func.func @transform_9(%arg0: i32) -> (i32, i32, i32, i32) {
    %c0_i32 = arith.constant 0 : i32
    %c0_i32_0 = arith.constant 0 : i32
    %c0_i32_1 = arith.constant 0 : i32
    %c0_i32_2 = arith.constant 0 : i32
    return %arg0, %c0_i32, %c0_i32_0, %c0_i32_1 : i32, i32, i32, i32
  }
}

</mosaic_0001>

<bundles_post_ra>
// kernel: tpu_custom_call.1
= control target key start
LH: loop header
LB: loop body
LE: loop exit
PB: predicated region body
PF: predicated region fallthrough
CT: control target
= control target key end

     0   :  { %15 = vsyncpa [#allocation3], 0  ;;  %vm150_vm0 = vcmask 261120   ;;  %v2881_v3 = vmov 0   ;;  %s3507_s0 = inlined_call_operand.vmem [shape: f32[32,32], index: 0, kind: input, shape index: {}]   ;;  %s3508_s1 = inlined_call_operand.vmem [shape: bf16[96,32], index: 1, kind: input, shape index: {}]   ;;  %s3509_s2 = inlined_call_operand.vmem [shape: f32[96,1], index: 2, kind: input, shape index: {}]   ;;  %s3510_s3 = inlined_call_operand.vmem [shape: bf16[32,32], index: 3, kind: input, shape index: {}]   ;;  %s3511_s4 = inlined_call_operand.vmem [shape: bf16[32,64], index: 4, kind: input, shape index: {}]   ;;  %s3512_s5 = inlined_call_operand.vmem [shape: f32[1,64], index: 5, kind: input, shape index: {}]   ;;  %s3513_s6 = inlined_call_operand.vmem [shape: bf16[64,32], index: 6, kind: input, shape index: {}]   ;;  %s3514_s7 = inlined_call_operand.vmem [shape: f32[6,32], index: 7, kind: input, shape index: {}]   ;;  %s3515_s8 = inlined_call_operand.hbm [shape: f32[32,32], index: 8, kind: output, shape index: {0}]   ;;  %s3516_s9 = inlined_call_operand.hbm [shape: bf16[4,4,8,8], index: 9, kind: output, shape index: {1}]  }
   0x1   :  { %v34_v0 = vld [vmem:[%s3507_s0] sm:$0xff]  ;;  %v2945_v1 = vld [vmem:[%s3509_s2 + $0x10] sm:$0xff]  ;;  %2722 = vset.pattern.permute.xlu0 %v2881_v3  ;;  %2723 = vset.pattern.permute.xlu1 %v2881_v3 }
   0x2   :  { %v35_v2 = vpack.c.bf16 %v34_v0, %v34_v0  ;;  %v2950_v4 = vld [vmem:[%s3509_s2] sm:$0xff]  ;;  %72 = vperm.xlu0 %2722, %v2945_v1   ;;  %2727 = vset.pattern.permute.xlu2 %v2881_v3 }
   0x3   :  { %62 = vperm.xlu1 %2723, %v2950_v4  }
   0x4   :  { %v170_v5 = vsel %vm150_vm0, %v35_v2, 0 }
   0x5   :  { %179 = vmatpush.bf16.xpose.msra.mxu0 %v170_v5 }
   0x6   :  { %16 = vsyncpa [#allocation5], 0  ;;  %v2676_v6 = vld [vmem:[%s3508_s1] sm:$0xff]  ;;  %v2961_v7 = vld [vmem:[%s3509_s2 + $0x30] sm:$0xff]  ;;  %vm243_vm1 = vcmask 1043456   ;;  %vm239_vm2 = vcmask 64512  }
   0x7   :  { %v2968_v8 = vld [vmem:[%s3509_s2 + $0x8] sm:$0xff]  ;;  %v2974_v9 = vld [vmem:[%s3509_s2 + $0x18] sm:$0xff]  ;;  %v2990_v12 = vld [vmem:[%s3509_s2 + $0x20] sm:$0xff]  ;;  %vm413_vm3 = vcmask 60416   ;;  %vm2287_vm11 = vcmask 523264   ;;  %s2440_s27 = sshll.u32 %s3516_s9, 4  ;;  %s2441_s27 = int_to_ptr.hbm [resolvable:$true] %s2440_s27 }
   0x8   :  { %67 = vperm.xlu2 %2727, %v2968_v8   ;;  %v2677_v10 = vld [vmem:[%s3508_s1 + $0x8] sm:$0xff]  ;;  %v2983_v11 = vld [vmem:[%s3509_s2 + $0x38] sm:$0xff]  ;;  %v2678_v14 = vld [vmem:[%s3508_s1 + $0x10] sm:$0xff]  ;;  %s2885_s28 = smov 4   ;;  %s2886_s9 = smov [#allocation2]  }
   0x9   :  { %v2996_v13 = vld [vmem:[%s3509_s2 + $0x28] sm:$0xff]  ;;  %v2679_v15 = vld [vmem:[%s3508_s1 + $0x18] sm:$0xff]  ;;  %v2680_v56 = vld [vmem:[%s3508_s1 + $0x20] sm:$0xff]  ;;  %s2425_s29 = sshll.u32 %s2886_s9, 4  ;;  %s2427_s10 = sshll.u32 %s3515_s8, 4  ;;  %s2426_s29 = int_to_ptr.vmem [resolvable:$true] %s2425_s29  ;;  %s2428_s10 = int_to_ptr.hbm [resolvable:$true] %s2427_s10 }
   0xa   :  { %92 = vperm.xlu0 %2722, %v2961_v7   ;;  %v2681_v62 = vld [vmem:[%s3508_s1 + $0x28] sm:$0xff]  ;;  %s2888_s11 = smov 8  }
   0xc   :  { %2481 = vmatmul.msk.bf16.vlgmr.msra.gmra.mxu0 %vm150_vm0, %v2676_v6 }
  0x10   :  { %82 = vperm.xlu2 %2727, %v2990_v12  }
  0x12   :  { %77 = vperm.xlu0 %2722, %v2974_v9  }
  0x18   :  { %87 = vperm.xlu2 %2727, %v2996_v13  }
  0x1a   :  { %97 = vperm.xlu0 %2722, %v2983_v11  }
  0x1c   :  { %2482 = vmatmul.msk.bf16.gmra.mxu0 %vm150_vm0, %v2677_v10 }
  0x2c   :  { %2483 = vmatmul.msk.bf16.gmra.mxu0 %vm150_vm0, %v2678_v14  ;;  %v3030_v14 = vld [vmem:[%s3509_s2 + $0x50] sm:$0xff] }
  0x3c   :  { %2484 = vmatmul.msk.bf16.gmra.mxu0 %vm150_vm0, %v2679_v15  ;;  %v3036_v15 = vld [vmem:[%s3509_s2 + $0x58] sm:$0xff] }
  0x4c   :  { %2485 = vmatmul.msk.bf16.gmra.mxu0 %vm150_vm0, %v2680_v56 }
  0x5c   :  { %2486 = vmatmul.msk.bf16.gmra.mxu0 %vm150_vm0, %v2681_v62 }
  0x62   :  { %v68_v18 = vpop.permute.xlu2 %67 }
  0x6a   :  { %v83_v33 = vpop.permute.xlu2 %82 }
  0x72   :  { %v88_v38 = vpop.permute.xlu2 %87 }
  0x74   :  { %v73_v17 = vpop.permute.xlu0 %72 }
  0x75   :  { %v63_v22 = vpop.permute.xlu1 %62 }
  0x7c   :  { %v93_v23 = vpop.permute.xlu0 %92 }
  0x84   :  { %v78_v29 = vpop.permute.xlu0 %77 }
  0x89   :  { %v181_v16 = vpop.f32.mrf.mxu0 }
  0x8a   :  { %v182_v24 = vadd.f32 %v181_v16, %v63_v22 }
  0x8c   :  { %v211_v27 = vpack.c.bf16 %v182_v24, %v182_v24  ;;  %v98_v47 = vpop.permute.xlu0 %97 }
  0x91   :  { %v183_v19 = vpop.f32.mrf.mxu0 }
  0x92   :  { %v184_v20 = vadd.f32 %v183_v19, %v68_v18 }
  0x94   :  { %v212_v21 = vpack.c.bf16 %v184_v20, %v184_v20 }
  0x96   :  { %260 = vxpose.xlu2.c.b16.start.end [1/1] (short) (narrow) %v212_v21, 16 }
  0x99   :  { %v186_v25 = vpop.f32.mrf.mxu0 }
  0x9a   :  { %v187_v26 = vadd.f32 %v186_v25, %v73_v17 }
  0x9c   :  { %v213_v28 = vpack.c.bf16 %v187_v26, %v187_v26 }
  0x9e   :  { %2724 = vxpose.binary.xlu1.c.b16.start.end [1/2] (short) (narrow) %v211_v27, %v213_v28, 16 }
  0xa1   :  { %v188_v30 = vpop.f32.mrf.mxu0 }
  0xa2   :  { %v189_v31 = vadd.f32 %v188_v30, %v78_v29 }
  0xa4   :  { %v214_v32 = vpack.c.bf16 %v189_v31, %v189_v31 }
  0xa6   :  { %330 = vxpose.xlu0.c.b16.start.end [1/1] (short) (narrow) %v214_v32, 16 }
  0xa9   :  { %v191_v34 = vpop.f32.mrf.mxu0 }
  0xaa   :  { %v192_v35 = vadd.f32 %v191_v34, %v83_v33  ;;  %v3050_v34 = vld [vmem:[%s3509_s2 + $0x40] sm:$0xff] }
  0xac   :  { %v215_v36 = vpack.c.bf16 %v192_v35, %v192_v35 }
  0xae   :  { %v245_v37 = vsel %vm243_vm1, %v215_v36, 0 }
  0xaf   :  { %254 = vmatpush.bf16.msra.mxu2 %v245_v37  ;;  %v3058_v37 = vld [vmem:[%s3509_s2 + $0x48] sm:$0xff] }
  0xb1   :  { %v193_v39 = vpop.f32.mrf.mxu0 }
  0xb2   :  { %v194_v40 = vadd.f32 %v193_v39, %v88_v38 }
  0xb4   :  { %v216_v41 = vpack.c.bf16 %v194_v40, %v194_v40 }
  0xb6   :  { %v280_v42 = vsel %vm243_vm1, %v216_v41, 0  ;;  %v2504_v41 = vld [vmem:[%s3507_s0 + $0x8] sm:$0xff] }
  0xb7   :  { %289 = vmatpush.bf16.msrb.mxu2 %v280_v42 }
  0xb9   :  { %v196_v43 = vpop.f32.mrf.mxu0 }
  0xba   :  { %v197_v44 = vadd.f32 %v196_v43, %v93_v23  ;;  %v547_v43 = vpack.c.bf16 %v2504_v41, %v2504_v41  ;;  %v2682_v41 = vld [vmem:[%s3510_s3] sm:$0xff] }
  0xbc   :  { %v217_v45 = vpack.c.bf16 %v197_v44, %v197_v44 }
  0xbe   :  { %v315_v46 = vsel %vm243_vm1, %v217_v45, 0 }
  0xbf   :  { %324 = vmatpush.bf16.msra.mxu3 %v315_v46 }
  0xc1   :  { %v198_v48 = vpop.f32.mrf.mxu0 }
  0xc2   :  { %v199_v49 = vadd.f32 %v198_v48, %v98_v47 }
  0xc4   :  { %v218_v50 = vpack.c.bf16 %v199_v49, %v199_v49  ;;  %v681_v49 = vsel %vm150_vm0, %v547_v43, 0 }
  0xc6   :  { %v350_v51 = vsel %vm243_vm1, %v218_v50, 0 }
  0xc7   :  { %359 = vmatpush.bf16.msra.mxu1 %v350_v51 }
  0xc9   :  { %v201_v38 = vpop.f32.mrf.mxu0 }
  0xd1   :  { %v203_v40 = vpop.f32.mrf.mxu0 }
  0xd9   :  { %v206_v47 = vpop.f32.mrf.mxu0 }
 0x137   :  { %v268_v55 = vpop.trf.xlu2 }
 0x14a   :  { %v2725_v52 = vpop.trf.xlu1 }
 0x14b   :  { %2489 = vmatmul.msk.bf16.vlgmr.msra.gmra.mxu3 %vm239_vm2, %v2725_v52 }
 0x152   :  { %v2726_v53 = vpop.trf.xlu1  ;;  %v338_v54 = vpop.trf.xlu0 }
 0x153   :  { %2487 = vmatmul.msk.bf16.vlgmr.msra.gmra.mxu2 %vm239_vm2, %v2726_v53  ;;  %2490 = vmatmul.msk.bf16.vlgmr.msra.gmra.mxu1 %vm239_vm2, %v338_v54 }
 0x163   :  { %2488 = vmatmul.msk.bf16.vlgmr.msrb.gmra.mxu2 %vm239_vm2, %v268_v55 }
 0x1ce   :  { %v326_v57 = vpop.f32.mrf.mxu3 }
 0x1cf   :  { %v371_v58 = vsel %vm239_vm2, %v326_v57, -inf }
 0x1d0   :  { %372 = vmax.xlane.f32.xlu1 %v371_v58  ;;  %v361_v59 = vpop.f32.mrf.mxu1 }
 0x1d1   :  { %v374_v6 = vsel %vm239_vm2, %v361_v59, -inf }
 0x1d6   :  { %v256_v60 = vpop.f32.mrf.mxu2  ;;  %v328_v61 = vpop.f32.mrf.mxu3 }
 0x1d7   :  { %v365_v63 = vsel %vm239_vm2, %v256_v60, -inf }
 0x1d8   :  { %366 = vmax.xlane.f32.xlu2 %v365_v63  ;;  %v363_v0 = vpop.f32.mrf.mxu1  ;;  %v2684_v63 = vld [vmem:[%s3508_s1] sm:$0xff] }
 0x1de   :  { %v258_v2 = vpop.f32.mrf.mxu2 }
 0x1e6   :  { %v291_v3 = vpop.f32.mrf.mxu2 }
 0x1e7   :  { %v368_v5 = vsel %vm239_vm2, %v291_v3, -inf }
 0x1e8   :  { %369 = vmax.xlane.f32.xlu1 %v368_v5 }
 0x1ee   :  { %v293_v10 = vpop.f32.mrf.mxu2 }
 0x1f0   :  { %375 = vmax.xlane.f32.xlu1 %v374_v6 }
 0x209   :  { %112 = vperm.xlu1 %2723, %v3030_v14  }
 0x211   :  { %117 = vperm.xlu1 %2723, %v3036_v15  }
 0x219   :  { %574 = vperm.xlu1 %2723, %v2950_v4  }
 0x221   :  { %594 = vperm.xlu1 %2723, %v2990_v12  }
 0x229   :  { %579 = vperm.xlu1 %2723, %v2968_v8  }
 0x231   :  { %599 = vperm.xlu1 %2723, %v2996_v13  }
 0x239   :  { %609 = vperm.xlu1 %2723, %v2983_v11  }
 0x243   :  { %v373_v16 = vpop.xlane.xlu1 %372 }
 0x244   :  { %v379_v17 = vsub.f32 %v326_v57, %v373_v16  ;;  %v208_v16 = vpop.f32.mrf.mxu0 }
 0x246   :  { %v385_v18 = vmul.f32 1.442695, %v379_v17 }
 0x248   :  { %2747 = vpow2.f32 %v385_v18 }
 0x24b   :  { %v367_v19 = vpop.xlane.xlu2 %366 }
 0x24c   :  { %v377_v20 = vsub.f32 %v256_v60, %v367_v19 }
 0x24e   :  { %v2748_v21 = vpop.eup %2747  ;;  %v381_v22 = vmul.f32 1.442695, %v377_v20  ;;  %v2685_v20 = vld [vmem:[%s3508_s1 + $0x8] sm:$0xff] }
 0x24f   :  { %v395_v23 = vsel %vm239_vm2, %v2748_v21, 0.0 }
 0x250   :  { %2749 = vpow2.f32 %v381_v22  ;;  %396 = vadd.xlane.f32.xlu0 %v395_v23 }
 0x256   :  { %v2750_v24 = vpop.eup %2749 }
 0x257   :  { %v389_v25 = vsel %vm239_vm2, %v2750_v24, 0.0 }
 0x258   :  { %390 = vadd.xlane.f32.xlu2 %v389_v25  ;;  %v2686_v25 = vld [vmem:[%s3508_s1 + $0x10] sm:$0xff] }
 0x25b   :  { %v370_v26 = vpop.xlane.xlu1 %369 }
 0x25c   :  { %v378_v27 = vsub.f32 %v291_v3, %v370_v26  ;;  %v2687_v26 = vld [vmem:[%s3508_s1 + $0x18] sm:$0xff] }
 0x25e   :  { %v383_v28 = vmul.f32 1.442695, %v378_v27 }
 0x260   :  { %2751 = vpow2.f32 %v383_v28 }
 0x263   :  { %v376_v29 = vpop.xlane.xlu1 %375 }
 0x264   :  { %v380_v30 = vsub.f32 %v361_v59, %v376_v29 }
 0x266   :  { %v2752_v31 = vpop.eup %2751  ;;  %v387_v32 = vmul.f32 1.442695, %v380_v30 }
 0x267   :  { %v392_v33 = vsel %vm239_vm2, %v2752_v31, 0.0 }
 0x268   :  { %2753 = vpow2.f32 %v387_v32  ;;  %393 = vadd.xlane.f32.xlu0 %v392_v33 }
 0x26e   :  { %v2754_v35 = vpop.eup %2753 }
 0x26f   :  { %v398_v36 = vsel %vm239_vm2, %v2754_v35, 0.0 }
 0x270   :  { %102 = vperm.xlu2 %2727, %v3050_v34   ;;  %399 = vadd.xlane.f32.xlu0 %v398_v36 }
 0x278   :  { %584 = vperm.xlu2 %2727, %v2945_v1  }
 0x27b   :  { %v113_v48 = vpop.permute.xlu1 %112 }
 0x27c   :  { %v207_v51 = vadd.f32 %v206_v47, %v113_v48 }
 0x27e   :  { %v221_v54 = vpack.c.bf16 %v207_v51, %v207_v51 }
 0x283   :  { %v118_v17 = vpop.permute.xlu1 %117 }
 0x284   :  { %107 = vperm.xlu0 %2722, %v3058_v37   ;;  %v209_v19 = vadd.f32 %v208_v16, %v118_v17 }
 0x28b   :  { %v575_v28 = vpop.permute.xlu1 %574 }
 0x28c   :  { %604 = vperm.xlu0 %2722, %v2961_v7  }
 0x293   :  { %v595_v30 = vpop.permute.xlu1 %594 }
 0x294   :  { %589 = vperm.xlu0 %2722, %v2974_v9  }
 0x29b   :  { %v580_v36 = vpop.permute.xlu1 %579 }
 0x2c3   :  { %v397_v39 = vpop.xlane.xlu0 %396 }
 0x2c4   :  { %2755 = vrcp.f32 %v397_v39 }
 0x2ca   :  { %v2756_v42 = vpop.eup %2755 }
 0x2cb   :  { %v391_v44 = vpop.xlane.xlu2 %390  ;;  %v407_v45 = vmul.f32 %v2756_v42, %v2748_v21  ;;  %v222_v21 = vpack.c.bf16 %v209_v19, %v209_v19 }
 0x2cc   :  { %2757 = vrcp.f32 %v391_v44 }
 0x2cd   :  { %v411_v46 = vpack.c.bf16 %v407_v45, %v407_v45 }
 0x2cf   :  { %416 = vst.msk [vmem:[#allocation4 + $0x8] sm:$0xf] %vm413_vm3, %v411_v46  ;;  %v460_v50 = vsel %vm239_vm2, %v411_v46, 0 }
 0x2d0   :  { %469 = vmatpush.bf16.xpose.msrb.mxu1 %v460_v50 }
 0x2d2   :  { %v2758_v52 = vpop.eup %2757 }
 0x2d3   :  { %v405_v53 = vmul.f32 %v2758_v52, %v2750_v24  ;;  %v103_v56 = vpop.permute.xlu2 %102 }
 0x2d4   :  { %v202_v58 = vadd.f32 %v201_v38, %v103_v56 }
 0x2d5   :  { %v409_v55 = vpack.c.bf16 %v405_v53, %v405_v53 }
 0x2d6   :  { %v219_v60 = vpack.c.bf16 %v202_v58, %v202_v58 }
 0x2d7   :  { %2493 = vmatmul.msk.bf16.vlgmr.msrb.gmra.mxu1 %vm239_vm2, %v221_v54  ;;  %414 = vst.msk [vmem:[#allocation4] sm:$0xf] %vm413_vm3, %v409_v55  ;;  %v422_v57 = vsel %vm239_vm2, %v409_v55, 0 }
 0x2d8   :  { %690 = vmatpush.bf16.xpose.msra.mxu1 %v681_v49  ;;  %431 = vmatpush.bf16.xpose.msra.mxu2 %v422_v57 }
 0x2db   :  { %v394_v59 = vpop.xlane.xlu0 %393  ;;  %v585_v43 = vpop.permute.xlu2 %584 }
 0x2dc   :  { %2759 = vrcp.f32 %v394_v59 }
 0x2df   :  { %2491 = vmatmul.msk.bf16.vlgmr.msra.gmra.mxu2 %vm239_vm2, %v219_v60 }
 0x2e2   :  { %v2760_v61 = vpop.eup %2759 }
 0x2e3   :  { %v400_v62 = vpop.xlane.xlu0 %399  ;;  %v406_v0 = vmul.f32 %v2760_v61, %v2752_v31 }
 0x2e4   :  { %2761 = vrcp.f32 %v400_v62  ;;  %v600_v62 = vpop.permute.xlu1 %599 }
 0x2e5   :  { %v410_v2 = vpack.c.bf16 %v406_v0, %v406_v0 }
 0x2e7   :  { %2529 = vmatmul.msk.bf16.vlgmr.msra.gmra.mxu1 %vm150_vm0, %v2684_v63  ;;  %415 = vst.msk [vmem:[#allocation4 + $0x4] sm:$0xf] %vm413_vm3, %v410_v2  ;;  %v441_v3 = vsel %vm239_vm2, %v410_v2, 0 }
 0x2e8   :  { %450 = vmatpush.bf16.xpose.msrb.mxu3 %v441_v3 }
 0x2ea   :  { %v2762_v5 = vpop.eup %2761 }
 0x2eb   :  { %v408_v6 = vmul.f32 %v2762_v5, %v2754_v35  ;;  %v2683_v35 = vld [vmem:[%s3510_s3 + $0x8] sm:$0xff] }
 0x2ed   :  { %v412_v10 = vpack.c.bf16 %v408_v6, %v408_v6 }
 0x2ef   :  { %417 = vst.msk [vmem:[#allocation4 + $0xc] sm:$0xf] %vm413_vm3, %v412_v10  ;;  %v479_v18 = vsel %vm239_vm2, %v412_v10, 0 }
 0x2f0   :  { %488 = vmatpush.bf16.xpose.msrb.mxu2 %v479_v18  ;;  %537 = vmatpush.bf16.msra.mxu3 %v2683_v35 }
 0x2f4   :  { %538 = vmatpush.bf16.msra.mxu3 %v2682_v41 }
 0x2f6   :  { %v108_v22 = vpop.permute.xlu0 %107 }
 0x2f7   :  { %v204_v23 = vadd.f32 %v203_v40, %v108_v22  ;;  %2494 = vmatmul.msk.bf16.vlgmr.msrb.gmra.mxu2 %vm239_vm2, %v222_v21  ;;  %2530 = vmatmul.msk.bf16.gmra.mxu1 %vm150_vm0, %v2685_v20  ;;  %v610_v20 = vpop.permute.xlu1 %609 }
 0x2f9   :  { %v220_v24 = vpack.c.bf16 %v204_v23, %v204_v23 }
 0x2fb   :  { %2492 = vmatmul.msk.bf16.vlgmr.msrb.gmra.mxu3 %vm239_vm2, %v220_v24 }
 0x2fe   :  { %v605_v48 = vpop.permute.xlu0 %604 }
 0x306   :  { %v590_v53 = vpop.permute.xlu0 %589 }
 0x307   :  { %2531 = vmatmul.msk.bf16.gmra.mxu1 %vm150_vm0, %v2686_v25 }
 0x317   :  { %2532 = vmatmul.msk.bf16.gmra.mxu1 %vm150_vm0, %v2687_v26 }
 0x354   :  { %v471_v27 = vpop.f32.mrf.mxu1 }
 0x35c   :  { %v473_v29 = vpop.f32.mrf.mxu1 }
 0x362   :  { %v433_v31 = vpop.f32.mrf.mxu2 }
 0x364   :  { %v692_v32 = vpop.f32.mrf.mxu1 }
 0x365   :  { %v693_v42 = vadd.f32 %v692_v32, %v575_v28  ;;  %v2688_v28 = vld [vmem:[%s3508_s1 + $0x20] sm:$0xff] }
 0x366   :  { %2533 = vmatmul.msk.bf16.gmra.mxu1 %vm150_vm0, %v2688_v28 }
 0x367   :  { %v722_v46 = vpack.c.bf16 %v693_v42, %v693_v42 }
 0x36a   :  { %v435_v33 = vpop.f32.mrf.mxu2 }
 0x36c   :  { %v694_v38 = vpop.f32.mrf.mxu1 }
 0x36d   :  { %v695_v39 = vadd.f32 %v694_v38, %v580_v36 }
 0x36f   :  { %v723_v40 = vpack.c.bf16 %v695_v39, %v695_v39 }
 0x371   :  { %769 = vxpose.xlu1.c.b16.start.end [1/1] (short) (narrow) %v723_v40, 16 }
 0x374   :  { %v697_v44 = vpop.f32.mrf.mxu1 }
 0x375   :  { %v698_v45 = vadd.f32 %v697_v44, %v585_v43 }
 0x377   :  { %v724_v47 = vpack.c.bf16 %v698_v45, %v698_v45  ;;  %v2689_v45 = vld [vmem:[%s3508_s1 + $0x28] sm:$0xff] }
 0x378   :  { %2534 = vmatmul.msk.bf16.gmra.mxu1 %vm150_vm0, %v2689_v45 }
 0x379   :  { %2728 = vxpose.binary.xlu2.c.b16.start.end [1/2] (short) (narrow) %v724_v47, %v722_v46, 16 }
 0x37a   :  { %v490_v49 = vpop.f32.mrf.mxu2 }
 0x37b   :  { %v495_v2 = vpack.c.bf16 %v490_v49, %v471_v27 }
 0x37c   :  { %v699_v50 = vpop.f32.mrf.mxu1 }
 0x37d   :  { %v700_v55 = vadd.f32 %v699_v50, %v590_v53 }
 0x37e   :  { %v452_v51 = vpop.f32.mrf.mxu3 }
 0x37f   :  { %v494_v52 = vpack.c.bf16 %v452_v51, %v433_v31  ;;  %v725_v59 = vpack.c.bf16 %v700_v55, %v700_v55 }
 0x381   :  { %500 = vxpose.xlu0.c.b16.start [1/2] (short) (narrow) %v494_v52, 16 }
 0x382   :  { %v492_v54 = vpop.f32.mrf.mxu2 }
 0x384   :  { %v702_v56 = vpop.f32.mrf.mxu1 }
 0x385   :  { %v703_v57 = vadd.f32 %v702_v56, %v595_v30 }
 0x386   :  { %v454_v58 = vpop.f32.mrf.mxu3 }
 0x387   :  { %v726_v60 = vpack.c.bf16 %v703_v57, %v703_v57 }
 0x389   :  { %v754_v61 = vsel %vm243_vm1, %v726_v60, 0  ;;  %839 = vxpose.xlu2.c.b16.start.end [1/1] (short) (narrow) %v725_v59, 16 }
 0x38a   :  { %763 = vmatpush.bf16.msra.mxu2 %v754_v61 }
 0x38c   :  { %v704_v63 = vpop.f32.mrf.mxu1 }
 0x38d   :  { %v705_v0 = vadd.f32 %v704_v63, %v600_v62 }
 0x38f   :  { %v727_v3 = vpack.c.bf16 %v705_v0, %v705_v0 }
 0x391   :  { %v789_v5 = vsel %vm243_vm1, %v727_v3, 0  ;;  %501 = vxpose.xlu0.c.b16.end [2/2] (short) (narrow) %v495_v2, 16 }
 0x392   :  { %798 = vmatpush.bf16.msrb.mxu3 %v789_v5 }
 0x394   :  { %v707_v6 = vpop.f32.mrf.mxu1 }
 0x395   :  { %v708_v10 = vadd.f32 %v707_v6, %v605_v48 }
 0x397   :  { %v728_v16 = vpack.c.bf16 %v708_v10, %v708_v10 }
 0x399   :  { %v824_v17 = vsel %vm243_vm1, %v728_v16, 0 }
 0x39a   :  { %833 = vmatpush.bf16.msrb.mxu2 %v824_v17 }
 0x39c   :  { %v709_v19 = vpop.f32.mrf.mxu1 }
 0x39d   :  { %v710_v21 = vadd.f32 %v709_v19, %v610_v20 }
 0x39f   :  { %v729_v23 = vpack.c.bf16 %v710_v21, %v710_v21 }
 0x3a1   :  { %v859_v25 = vsel %vm243_vm1, %v729_v23, 0 }
 0x3e3   :  { %v712_v5 = vpop.f32.mrf.mxu1 }
 0x3eb   :  { %v714_v16 = vpop.f32.mrf.mxu1 }
 0x3f5   :  { %v717_v20 = vpop.f32.mrf.mxu1 }
 0x41a   :  { %v2729_v18 = vpop.trf.xlu2 }
 0x41b   :  { %2535 = vmatmul.msk.bf16.vlgmr.msra.gmra.mxu2 %vm239_vm2, %v2729_v18 }
 0x41d   :  { %v777_v26 = vpop.trf.xlu1 }
 0x422   :  { %v2730_v22 = vpop.trf.xlu2 }
 0x42a   :  { %v847_v27 = vpop.trf.xlu2 }
 0x42b   :  { %2537 = vmatmul.msk.bf16.vlgmr.msrb.gmra.mxu2 %vm239_vm2, %v2730_v22 }
 0x42d   :  { %v508_v24 = vpop.trf.xlu0 }
 0x42e   :  { %2503 = vmatmul.msk.bf16.vlgmr.msra.gmra.mxu3 %vm150_vm0, %v508_v24 }
 0x42f   :  { %868 = vmatpush.bf16.msra.mxu3 %v859_v25 }
 0x43e   :  { %2536 = vmatmul.msk.bf16.vlgmr.msrb.gmra.mxu3 %vm239_vm2, %v777_v26 }
 0x44e   :  { %2538 = vmatmul.msk.bf16.vlgmr.msra.gmra.mxu3 %vm239_vm2, %v847_v27 }
 0x49e   :  { %v765_v29 = vpop.f32.mrf.mxu2 }
 0x49f   :  { %v874_v30 = vsel %vm239_vm2, %v765_v29, -inf }
 0x4a0   :  { %875 = vmax.xlane.f32.xlu2 %v874_v30 }
 0x4a6   :  { %v767_v31 = vpop.f32.mrf.mxu2 }
 0x4a7   :  { %v2692_v31 = vld [vmem:[%s3508_s1] sm:$0xff] }
 0x4ae   :  { %v835_v32 = vpop.f32.mrf.mxu2 }
 0x4af   :  { %v880_v33 = vsel %vm239_vm2, %v835_v32, -inf }
 0x4b0   :  { %881 = vmax.xlane.f32.xlu0 %v880_v33 }
 0x4b1   :  { %v540_v35 = vpop.f32.mrf.mxu3 }
 0x4b2   :  { %544 = vst.msk [vmem:[#allocation2] sm:$0xff] %vm150_vm0, %v540_v35 }
 0x4b6   :  { %v837_v36 = vpop.f32.mrf.mxu2 }
 0x4b9   :  { %v542_v38 = vpop.f32.mrf.mxu3 }
 0x4c1   :  { %v800_v39 = vpop.f32.mrf.mxu3 }
 0x4c2   :  { %v877_v40 = vsel %vm239_vm2, %v800_v39, -inf }
 0x4c3   :  { %878 = vmax.xlane.f32.xlu1 %v877_v40 }
 0x4c4   :  { %614 = vperm.xlu0 %2722, %v3050_v34  }
 0x4c9   :  { %v802_v41 = vpop.f32.mrf.mxu3 }
 0x4d1   :  { %v870_v42 = vpop.f32.mrf.mxu3 }
 0x4d2   :  { %v883_v43 = vsel %vm239_vm2, %v870_v42, -inf }
 0x4d3   :  { %884 = vmax.xlane.f32.xlu2 %v883_v43  ;;  %v719_v43 = vpop.f32.mrf.mxu1 }
 0x4d9   :  { %v872_v44 = vpop.f32.mrf.mxu3 }
 0x513   :  { %v876_v46 = vpop.xlane.xlu2 %875 }
 0x514   :  { %v886_v47 = vsub.f32 %v765_v29, %v876_v46 }
 0x516   :  { %v890_v48 = vmul.f32 1.442695, %v886_v47  ;;  %v2694_v47 = vld [vmem:[%s3508_s1 + $0x10] sm:$0xff] }
 0x518   :  { %2763 = vpow2.f32 %v890_v48  ;;  %v2695_v48 = vld [vmem:[%s3508_s1 + $0x18] sm:$0xff] }
 0x51e   :  { %v2764_v49 = vpop.eup %2763 }
 0x51f   :  { %v898_v50 = vsel %vm239_vm2, %v2764_v49, 0.0 }
 0x520   :  { %899 = vadd.xlane.f32.xlu2 %v898_v50 }
 0x523   :  { %v882_v51 = vpop.xlane.xlu0 %881 }
 0x524   :  { %v888_v52 = vsub.f32 %v835_v32, %v882_v51 }
 0x526   :  { %v894_v53 = vmul.f32 1.442695, %v888_v52 }
 0x528   :  { %2765 = vpow2.f32 %v894_v53 }
 0x52e   :  { %v2766_v54 = vpop.eup %2765 }
 0x52f   :  { %v904_v55 = vsel %vm239_vm2, %v2766_v54, 0.0 }
 0x530   :  { %905 = vadd.xlane.f32.xlu1 %v904_v55 }
 0x536   :  { %v879_v56 = vpop.xlane.xlu1 %878  ;;  %v615_v10 = vpop.permute.xlu0 %614 }
 0x537   :  { %v887_v57 = vsub.f32 %v800_v39, %v879_v56 }
 0x538   :  { %624 = vperm.xlu2 %2727, %v3030_v14  }
 0x539   :  { %v892_v58 = vmul.f32 1.442695, %v887_v57 }
 0x53b   :  { %2767 = vpow2.f32 %v892_v58  ;;  %v2691_v58 = vld [vmem:[%s3510_s3 + $0x8] sm:$0xff] }
 0x53c   :  { %1046 = vmatpush.bf16.msrb.mxu0 %v2691_v58 }
 0x540   :  { %629 = vperm.xlu2 %2727, %v3036_v15  }
 0x541   :  { %v2768_v59 = vpop.eup %2767 }
 0x542   :  { %v901_v60 = vsel %vm239_vm2, %v2768_v59, 0.0 }
 0x543   :  { %902 = vadd.xlane.f32.xlu1 %v901_v60 }
 0x546   :  { %v885_v61 = vpop.xlane.xlu2 %884 }
 0x547   :  { %v889_v62 = vsub.f32 %v870_v42, %v885_v61  ;;  %v2693_v42 = vld [vmem:[%s3508_s1 + $0x8] sm:$0xff] }
 0x548   :  { %1084 = vperm.xlu2 %2727, %v2950_v4  }
 0x549   :  { %v896_v63 = vmul.f32 1.442695, %v889_v62 }
 0x54b   :  { %2769 = vpow2.f32 %v896_v63  ;;  %v2690_v63 = vld [vmem:[%s3510_s3] sm:$0xff] }
 0x54c   :  { %1047 = vmatpush.bf16.msrb.mxu0 %v2690_v63 }
 0x550   :  { %1104 = vperm.xlu2 %2727, %v2990_v12  }
 0x551   :  { %v2770_v0 = vpop.eup %2769 }
 0x552   :  { %v907_v2 = vsel %vm239_vm2, %v2770_v0, 0.0 }
 0x553   :  { %908 = vadd.xlane.f32.xlu0 %v907_v2 }
 0x558   :  { %1114 = vperm.xlu2 %2727, %v2961_v7  }
 0x55c   :  { %619 = vperm.xlu1 %2723, %v3058_v37  }
 0x560   :  { %1099 = vperm.xlu2 %2727, %v2974_v9   ;;  %v713_v9 = vadd.f32 %v712_v5, %v615_v10 }
 0x564   :  { %1094 = vperm.xlu1 %2723, %v2945_v1  }
 0x567   :  { %1109 = vperm.xlu0 %2722, %v2996_v13   ;;  %v730_v13 = vpack.c.bf16 %v713_v9, %v713_v9 }
 0x56c   :  { %1089 = vperm.xlu1 %2723, %v2968_v8   ;;  %v3145_v8 = vld [vmem:[%s3507_s0 + $0x10] sm:$0xff] }
 0x56d   :  { %v1057_v17 = vpack.c.bf16 %v3145_v8, %v3145_v8 }
 0x56f   :  { %1119 = vperm.xlu0 %2722, %v2983_v11   ;;  %v1191_v22 = vsel %vm150_vm0, %v1057_v17, 0 }
 0x593   :  { %v900_v4 = vpop.xlane.xlu2 %899 }
 0x594   :  { %2771 = vrcp.f32 %v900_v4 }
 0x59a   :  { %v2772_v12 = vpop.eup %2771 }
 0x59b   :  { %v914_v3 = vmul.f32 %v2772_v12, %v2764_v49  ;;  %v625_v21 = vpop.permute.xlu2 %624 }
 0x59c   :  { %v718_v24 = vadd.f32 %v717_v20, %v625_v21 }
 0x59d   :  { %v918_v6 = vpack.c.bf16 %v914_v3, %v914_v3 }
 0x59e   :  { %v732_v25 = vpack.c.bf16 %v718_v24, %v718_v24 }
 0x59f   :  { %923 = vst.msk [vmem:[#allocation4 + $0x10] sm:$0xf] %vm413_vm3, %v918_v6  ;;  %v931_v7 = vsel %vm239_vm2, %v918_v6, 0 }
 0x5a0   :  { %940 = vmatpush.bf16.xpose.msra.mxu2 %v931_v7 }
 0x5a3   :  { %v906_v1 = vpop.xlane.xlu1 %905  ;;  %v630_v44 = vpop.permute.xlu2 %629 }
 0x5a4   :  { %2773 = vrcp.f32 %v906_v1  ;;  %v720_v45 = vadd.f32 %v719_v43, %v630_v44  ;;  %v2696_v43 = vld [vmem:[%s3508_s1 + $0x20] sm:$0xff] }
 0x5a6   :  { %v733_v46 = vpack.c.bf16 %v720_v45, %v720_v45 }
 0x5a7   :  { %2539 = vmatmul.msk.bf16.vlgmr.msra.gmra.mxu2 %vm239_vm2, %v730_v13 }
 0x5aa   :  { %v2774_v11 = vpop.eup %2773 }
 0x5ab   :  { %v916_v18 = vmul.f32 %v2774_v11, %v2766_v54  ;;  %v1085_v54 = vpop.permute.xlu2 %1084 }
 0x5ad   :  { %v920_v19 = vpack.c.bf16 %v916_v18, %v916_v18 }
 0x5af   :  { %925 = vst.msk [vmem:[#allocation4 + $0x18] sm:$0xf] %vm413_vm3, %v920_v19  ;;  %v969_v23 = vsel %vm239_vm2, %v920_v19, 0 }
 0x5b0   :  { %978 = vmatpush.bf16.xpose.msrb.mxu2 %v969_v23 }
 0x5b3   :  { %v1105_v60 = vpop.permute.xlu2 %1104 }
 0x5b6   :  { %v903_v26 = vpop.xlane.xlu1 %902 }
 0x5b7   :  { %2775 = vrcp.f32 %v903_v26  ;;  %2541 = vmatmul.msk.bf16.vlgmr.msrb.gmra.mxu2 %vm239_vm2, %v732_v25 }
 0x5b8   :  { %1200 = vmatpush.bf16.xpose.msra.mxu2 %v1191_v22 }
 0x5bb   :  { %v1115_v6 = vpop.permute.xlu2 %1114 }
 0x5bd   :  { %v2776_v27 = vpop.eup %2775 }
 0x5be   :  { %v915_v28 = vmul.f32 %v2776_v27, %v2768_v59 }
 0x5c0   :  { %v919_v29 = vpack.c.bf16 %v915_v28, %v915_v28 }
 0x5c2   :  { %924 = vst.msk [vmem:[#allocation4 + $0x14] sm:$0xf] %vm413_vm3, %v919_v29  ;;  %v950_v30 = vsel %vm239_vm2, %v919_v29, 0 }
 0x5c3   :  { %959 = vmatpush.bf16.xpose.msrb.mxu3 %v950_v30 }
 0x5c6   :  { %v909_v32 = vpop.xlane.xlu0 %908 }
 0x5c7   :  { %2777 = vrcp.f32 %v909_v32  ;;  %2577 = vmatmul.msk.bf16.vlgmr.msra.gmra.mxu2 %vm150_vm0, %v2692_v31 }
 0x5cd   :  { %v2778_v33 = vpop.eup %2777 }
 0x5ce   :  { %v620_v35 = vpop.permute.xlu1 %619  ;;  %v917_v36 = vmul.f32 %v2778_v33, %v2770_v0 }
 0x5cf   :  { %v715_v38 = vadd.f32 %v714_v16, %v620_v35  ;;  %v1100_v16 = vpop.permute.xlu2 %1099 }
 0x5d0   :  { %v921_v39 = vpack.c.bf16 %v917_v36, %v917_v36 }
 0x5d1   :  { %v731_v40 = vpack.c.bf16 %v715_v38, %v715_v38 }
 0x5d2   :  { %926 = vst.msk [vmem:[#allocation4 + $0x1c] sm:$0xf] %vm413_vm3, %v921_v39  ;;  %v988_v41 = vsel %vm239_vm2, %v921_v39, 0 }
 0x5d3   :  { %2540 = vmatmul.msk.bf16.vlgmr.msrb.gmra.mxu3 %vm239_vm2, %v731_v40 }
 0x5d4   :  { %997 = vmatpush.bf16.xpose.msra.mxu3 %v988_v41 }
 0x5d6   :  { %v1095_v53 = vpop.permute.xlu1 %1094 }
 0x5d7   :  { %2578 = vmatmul.msk.bf16.gmra.mxu2 %vm150_vm0, %v2693_v42 }
 0x5d9   :  { %v1110_v22 = vpop.permute.xlu0 %1109 }
 0x5de   :  { %v1090_v56 = vpop.permute.xlu1 %1089 }
 0x5e1   :  { %v1120_v32 = vpop.permute.xlu0 %1119 }
 0x5e3   :  { %2542 = vmatmul.msk.bf16.vlgmr.msra.gmra.mxu3 %vm239_vm2, %v733_v46  ;;  %v2697_v46 = vld [vmem:[%s3508_s1 + $0x28] sm:$0xff] }
 0x5e7   :  { %2579 = vmatmul.msk.bf16.gmra.mxu2 %vm150_vm0, %v2694_v47 }
 0x5f7   :  { %2580 = vmatmul.msk.bf16.gmra.mxu2 %vm150_vm0, %v2695_v48 }
 0x607   :  { %2581 = vmatmul.msk.bf16.gmra.mxu2 %vm150_vm0, %v2696_v43 }
 0x617   :  { %2582 = vmatmul.msk.bf16.gmra.mxu2 %vm150_vm0, %v2697_v46 }
 0x62a   :  { %v942_v49 = vpop.f32.mrf.mxu2 }
 0x632   :  { %v944_v50 = vpop.f32.mrf.mxu2 }
 0x63a   :  { %v980_v51 = vpop.f32.mrf.mxu2 }
 0x642   :  { %v982_v52 = vpop.f32.mrf.mxu2 }
 0x64a   :  { %v1202_v55 = vpop.f32.mrf.mxu2 }
 0x64b   :  { %v1203_v2 = vadd.f32 %v1202_v55, %v1085_v54 }
 0x64d   :  { %v1232_v3 = vpack.c.bf16 %v1203_v2, %v1203_v2 }
 0x652   :  { %v1204_v57 = vpop.f32.mrf.mxu2 }
 0x653   :  { %v1205_v59 = vadd.f32 %v1204_v57, %v1090_v56 }
 0x655   :  { %v1233_v61 = vpack.c.bf16 %v1205_v59, %v1205_v59 }
 0x656   :  { %v961_v62 = vpop.f32.mrf.mxu3 }
 0x657   :  { %v1003_v0 = vpack.c.bf16 %v961_v62, %v942_v49  ;;  %1279 = vxpose.xlu0.c.b16.start.end [1/1] (short) (narrow) %v1233_v61, 16 }
 0x659   :  { %1009 = vxpose.xlu2.c.b16.start [1/2] (short) (narrow) %v1003_v0, 16 }
 0x65a   :  { %v1207_v4 = vpop.f32.mrf.mxu2 }
 0x65b   :  { %v1208_v12 = vadd.f32 %v1207_v4, %v1095_v53 }
 0x65d   :  { %v1234_v5 = vpack.c.bf16 %v1208_v12, %v1208_v12 }
 0x65e   :  { %v963_v10 = vpop.f32.mrf.mxu3 }
 0x65f   :  { %2731 = vxpose.binary.xlu1.c.b16.start.end [1/2] (short) (narrow) %v1234_v5, %v1232_v3, 16 }
 0x662   :  { %v1209_v7 = vpop.f32.mrf.mxu2 }
 0x663   :  { %v1210_v13 = vadd.f32 %v1209_v7, %v1100_v16 }
 0x665   :  { %v1235_v18 = vpack.c.bf16 %v1210_v13, %v1210_v13 }
 0x666   :  { %v999_v9 = vpop.f32.mrf.mxu3 }
 0x667   :  { %v1004_v1 = vpack.c.bf16 %v999_v9, %v980_v51 }
 0x669   :  { %1010 = vxpose.xlu2.c.b16.end [2/2] (short) (narrow) %v1004_v1, 16 }
 0x66a   :  { %v1212_v11 = vpop.f32.mrf.mxu2 }
 0x66b   :  { %v1213_v17 = vadd.f32 %v1212_v11, %v1105_v60 }
 0x66d   :  { %v1236_v19 = vpack.c.bf16 %v1213_v17, %v1213_v17  ;;  %v1580_v17 = vld [vmem:[%s3509_s2] sm:$0xff] }
 0x66e   :  { %v1001_v20 = vpop.f32.mrf.mxu3 }
 0x66f   :  { %v1264_v21 = vsel %vm243_vm1, %v1236_v19, 0  ;;  %1349 = vxpose.xlu1.c.b16.start.end [1/1] (short) (narrow) %v1235_v18, 16  ;;  %v1582_v18 = vld [vmem:[%s3509_s2 + $0x10] sm:$0xff]  ;;  %v1583_v19 = vld [vmem:[%s3509_s2 + $0x18] sm:$0xff] }
 0x670   :  { %1273 = vmatpush.bf16.msrb.mxu3 %v1264_v21  ;;  %v1587_v20 = vld [vmem:[%s3509_s2 + $0x38] sm:$0xff]  ;;  %v1584_v21 = vld [vmem:[%s3509_s2 + $0x20] sm:$0xff] }
 0x672   :  { %v1214_v23 = vpop.f32.mrf.mxu2 }
 0x673   :  { %v1215_v24 = vadd.f32 %v1214_v23, %v1110_v22 }
 0x675   :  { %v1237_v25 = vpack.c.bf16 %v1215_v24, %v1215_v24 }
 0x677   :  { %v1299_v26 = vsel %vm243_vm1, %v1237_v25, 0 }
 0x678   :  { %1308 = vmatpush.bf16.msra.mxu0 %v1299_v26 }
 0x67a   :  { %v1217_v27 = vpop.f32.mrf.mxu2 }
 0x67b   :  { %v1218_v28 = vadd.f32 %v1217_v27, %v1115_v6 }
 0x67d   :  { %v1238_v29 = vpack.c.bf16 %v1218_v28, %v1218_v28 }
 0x67f   :  { %v1334_v30 = vsel %vm243_vm1, %v1238_v29, 0 }
 0x680   :  { %1343 = vmatpush.bf16.msra.mxu3 %v1334_v30 }
 0x682   :  { %v1219_v31 = vpop.f32.mrf.mxu2 }
 0x683   :  { %v1220_v33 = vadd.f32 %v1219_v31, %v1120_v32 }
 0x685   :  { %v1239_v35 = vpack.c.bf16 %v1220_v33, %v1220_v33 }
 0x687   :  { %v1369_v38 = vsel %vm243_vm1, %v1239_v35, 0 }
 0x68a   :  { %v1222_v29 = vpop.f32.mrf.mxu2 }
 0x6fa   :  { %v1017_v36 = vpop.trf.xlu2 }
 0x6fb   :  { %2551 = vmatmul.msk.bf16.vlgmr.msrb.gmra.mxu0 %vm150_vm0, %v1017_v36 }
 0x6fc   :  { %1378 = vmatpush.bf16.msrb.mxu0 %v1369_v38 }
 0x703   :  { %v1287_v39 = vpop.trf.xlu0 }
 0x70b   :  { %v2732_v40 = vpop.trf.xlu1  ;;  %2584 = vmatmul.msk.bf16.vlgmr.msra.gmra.mxu0 %vm239_vm2, %v1287_v39 }
 0x70c   :  { %2583 = vmatmul.msk.bf16.vlgmr.msrb.gmra.mxu3 %vm239_vm2, %v2732_v40 }
 0x713   :  { %v2733_v41 = vpop.trf.xlu1 }
 0x71b   :  { %v1357_v42 = vpop.trf.xlu1 }
 0x71c   :  { %2585 = vmatmul.msk.bf16.vlgmr.msra.gmra.mxu3 %vm239_vm2, %v2733_v41  ;;  %2586 = vmatmul.msk.bf16.vlgmr.msrb.gmra.mxu0 %vm239_vm2, %v1357_v42  ;;  %v1224_v41 = vpop.f32.mrf.mxu2 }
 0x778   :  { %v1049_v44 = vpop.f32.mrf.mxu0 }
 0x779   :  { %1054 = vst.msk [vmem:[#allocation2 + $0x8] sm:$0xff] %vm150_vm0, %v1049_v44 }
 0x780   :  { %v1051_v45 = vpop.f32.mrf.mxu0 }
 0x781   :  { %v3243_v45 = vld [vmem:[%s3507_s0 + $0x18] sm:$0xff] }
 0x788   :  { %v1310_v47 = vpop.f32.mrf.mxu0 }
 0x789   :  { %v1387_v48 = vsel %vm239_vm2, %v1310_v47, -inf }
 0x78a   :  { %1388 = vmax.xlane.f32.xlu1 %v1387_v48  ;;  %v1567_v48 = vpack.c.bf16 %v3243_v45, %v3243_v45 }
 0x78f   :  { %v1275_v49 = vpop.f32.mrf.mxu3 }
 0x790   :  { %v1312_v50 = vpop.f32.mrf.mxu0  ;;  %v1384_v51 = vsel %vm239_vm2, %v1275_v49, -inf }
 0x791   :  { %1385 = vmax.xlane.f32.xlu0 %v1384_v51  ;;  %v1227_v51 = vpop.f32.mrf.mxu2 }
 0x797   :  { %v1277_v52 = vpop.f32.mrf.mxu3 }
 0x798   :  { %v1701_v52 = vsel %vm150_vm0, %v1567_v48, 0 }
 0x799   :  { %v1380_v53 = vpop.f32.mrf.mxu0 }
 0x79a   :  { %v1393_v54 = vsel %vm239_vm2, %v1380_v53, -inf }
 0x79b   :  { %1394 = vmax.xlane.f32.xlu1 %v1393_v54 }
 0x79f   :  { %v1345_v55 = vpop.f32.mrf.mxu3 }
 0x7a0   :  { %v1390_v56 = vsel %vm239_vm2, %v1345_v55, -inf }
 0x7a1   :  { %1391 = vmax.xlane.f32.xlu2 %v1390_v56  ;;  %v1382_v57 = vpop.f32.mrf.mxu0 }
 0x7a7   :  { %v1347_v58 = vpop.f32.mrf.mxu3 }
 0x7b4   :  { %1134 = vperm.xlu1 %2723, %v3030_v14  }
 0x7fd   :  { %v1389_v59 = vpop.xlane.xlu1 %1388 }
 0x7fe   :  { %v1397_v60 = vsub.f32 %v1310_v47, %v1389_v59  ;;  %v1229_v59 = vpop.f32.mrf.mxu2 }
 0x800   :  { %v1402_v61 = vmul.f32 1.442695, %v1397_v60 }
 0x802   :  { %2779 = vpow2.f32 %v1402_v61 }
 0x804   :  { %v1386_v62 = vpop.xlane.xlu0 %1385 }
 0x805   :  { %v1396_v63 = vsub.f32 %v1275_v49, %v1386_v62 }
 0x807   :  { %v1400_v0 = vmul.f32 1.442695, %v1396_v63  ;;  %v2700_v63 = vld [vmem:[%s3508_s1] sm:$0xff] }
 0x808   :  { %v2780_v2 = vpop.eup %2779 }
 0x809   :  { %2781 = vpow2.f32 %v1400_v0  ;;  %v1411_v4 = vsel %vm239_vm2, %v2780_v2, 0.0  ;;  %v2701_v0 = vld [vmem:[%s3508_s1 + $0x8] sm:$0xff] }
 0x80a   :  { %1412 = vadd.xlane.f32.xlu0 %v1411_v4  ;;  %v2703_v4 = vld [vmem:[%s3508_s1 + $0x18] sm:$0xff] }
 0x80e   :  { %v1395_v12 = vpop.xlane.xlu1 %1394 }
 0x80f   :  { %v2782_v3 = vpop.eup %2781  ;;  %v1399_v5 = vsub.f32 %v1380_v53, %v1395_v12 }
 0x810   :  { %v1408_v6 = vsel %vm239_vm2, %v2782_v3, 0.0 }
 0x811   :  { %v1406_v10 = vmul.f32 1.442695, %v1399_v5  ;;  %1409 = vadd.xlane.f32.xlu2 %v1408_v6 }
 0x813   :  { %2783 = vpow2.f32 %v1406_v10 }
 0x814   :  { %v1392_v14 = vpop.xlane.xlu2 %1391 }
 0x815   :  { %v1398_v7 = vsub.f32 %v1345_v55, %v1392_v14 }
 0x817   :  { %v1404_v9 = vmul.f32 1.442695, %v1398_v7 }
 0x819   :  { %v2784_v1 = vpop.eup %2783  ;;  %2785 = vpow2.f32 %v1404_v9 }
 0x81a   :  { %v1417_v16 = vsel %vm239_vm2, %v2784_v1, 0.0 }
 0x81b   :  { %1418 = vadd.xlane.f32.xlu0 %v1417_v16 }
 0x81f   :  { %v2786_v13 = vpop.eup %2785 }
 0x820   :  { %v1414_v11 = vsel %vm239_vm2, %v2786_v13, 0.0 }
 0x821   :  { %1415 = vadd.xlane.f32.xlu1 %v1414_v11 }
 0x826   :  { %v1135_v30 = vpop.permute.xlu1 %1134 }
 0x827   :  { %v1228_v55 = vadd.f32 %v1227_v51, %v1135_v30 }
 0x829   :  { %1124 = vperm.xlu2 %2727, %v3050_v34   ;;  %v1585_v34 = vld [vmem:[%s3509_s2 + $0x28] sm:$0xff]  ;;  %v1242_v58 = vpack.c.bf16 %v1228_v55, %v1228_v55 }
 0x82f   :  { %1129 = vperm.xlu0 %2722, %v3058_v37   ;;  %v1581_v37 = vld [vmem:[%s3509_s2 + $0x8] sm:$0xff] }
 0x831   :  { %1594 = vperm.xlu2 %2727, %v1580_v17  }
 0x837   :  { %1604 = vperm.xlu0 %2722, %v1582_v18  }
 0x839   :  { %1609 = vperm.xlu2 %2727, %v1583_v19  }
 0x83a   :  { %1139 = vperm.xlu1 %2723, %v3036_v15   ;;  %v1586_v15 = vld [vmem:[%s3509_s2 + $0x30] sm:$0xff] }
 0x83f   :  { %1619 = vperm.xlu0 %2722, %v1585_v34   ;;  %v2699_v34 = vld [vmem:[%s3510_s3 + $0x8] sm:$0xff] }
 0x842   :  { %1599 = vperm.xlu1 %2723, %v1581_v37  }
 0x847   :  { %1629 = vperm.xlu0 %2722, %v1587_v20  }
 0x84a   :  { %1614 = vperm.xlu1 %2723, %v1584_v21  }
 0x852   :  { %1624 = vperm.xlu1 %2723, %v1586_v15   ;;  %v2698_v15 = vld [vmem:[%s3510_s3] sm:$0xff] }
 0x87d   :  { %v1413_v22 = vpop.xlane.xlu0 %1412 }
 0x87e   :  { %2787 = vrcp.f32 %v1413_v22 }
 0x884   :  { %v2788_v23 = vpop.eup %2787  ;;  %v1410_v24 = vpop.xlane.xlu2 %1409 }
 0x885   :  { %2789 = vrcp.f32 %v1410_v24  ;;  %v1425_v25 = vmul.f32 %v2788_v23, %v2780_v2  ;;  %v2702_v2 = vld [vmem:[%s3508_s1 + $0x10] sm:$0xff] }
 0x887   :  { %v1429_v26 = vpack.c.bf16 %v1425_v25, %v1425_v25 }
 0x889   :  { %1434 = vst.msk [vmem:[#allocation4 + $0x24] sm:$0xf] %vm413_vm3, %v1429_v26  ;;  %v1460_v27 = vsel %vm239_vm2, %v1429_v26, 0 }
 0x88a   :  { %1469 = vmatpush.bf16.xpose.msrb.mxu3 %v1460_v27 }
 0x88b   :  { %v2790_v28 = vpop.eup %2789 }
 0x88c   :  { %v1424_v31 = vmul.f32 %v2790_v28, %v2782_v3  ;;  %v1125_v35 = vpop.permute.xlu2 %1124 }
 0x88d   :  { %v1223_v38 = vadd.f32 %v1222_v29, %v1125_v35 }
 0x88e   :  { %v1419_v32 = vpop.xlane.xlu0 %1418  ;;  %v1428_v33 = vpack.c.bf16 %v1424_v31, %v1424_v31 }
 0x88f   :  { %2791 = vrcp.f32 %v1419_v32  ;;  %v1240_v42 = vpack.c.bf16 %v1223_v38, %v1223_v38 }
 0x890   :  { %1433 = vst.msk [vmem:[#allocation4 + $0x20] sm:$0xf] %vm413_vm3, %v1428_v33  ;;  %v1441_v36 = vsel %vm239_vm2, %v1428_v33, 0 }
 0x891   :  { %1450 = vmatpush.bf16.xpose.msrb.mxu1 %v1441_v36 }
 0x892   :  { %1556 = vmatpush.bf16.msra.mxu3 %v2699_v34 }
 0x894   :  { %v1416_v39 = vpop.xlane.xlu1 %1415  ;;  %v1595_v11 = vpop.permute.xlu2 %1594 }
 0x895   :  { %v2792_v40 = vpop.eup %2791  ;;  %2793 = vrcp.f32 %v1416_v39 }
 0x896   :  { %v1427_v43 = vmul.f32 %v2792_v40, %v2784_v1  ;;  %1557 = vmatpush.bf16.msra.mxu3 %v2698_v15 }
 0x898   :  { %2587 = vmatmul.msk.bf16.vlgmr.msrb.gmra.mxu1 %vm239_vm2, %v1240_v42  ;;  %v1431_v44 = vpack.c.bf16 %v1427_v43, %v1427_v43 }
 0x89a   :  { %1436 = vst.msk [vmem:[#allocation4 + $0x2c] sm:$0xf] %vm413_vm3, %v1431_v44  ;;  %v1498_v46 = vsel %vm239_vm2, %v1431_v44, 0 }
 0x89b   :  { %v2794_v47 = vpop.eup %2793  ;;  %1507 = vmatpush.bf16.xpose.msra.mxu1 %v1498_v46 }
 0x89c   :  { %v1426_v49 = vmul.f32 %v2794_v47, %v2786_v13  ;;  %v1610_v25 = vpop.permute.xlu2 %1609 }
 0x89e   :  { %v1430_v50 = vpack.c.bf16 %v1426_v49, %v1426_v49 }
 0x8a0   :  { %1435 = vst.msk [vmem:[#allocation4 + $0x28] sm:$0xf] %vm413_vm3, %v1430_v50  ;;  %v1479_v53 = vsel %vm239_vm2, %v1430_v50, 0 }
 0x8a1   :  { %v1130_v54 = vpop.permute.xlu0 %1129  ;;  %1488 = vmatpush.bf16.xpose.msra.mxu0 %v1479_v53 }
 0x8a2   :  { %v1225_v56 = vadd.f32 %v1224_v41, %v1130_v54 }
 0x8a4   :  { %v1241_v57 = vpack.c.bf16 %v1225_v56, %v1225_v56 }
 0x8a6   :  { %2588 = vmatmul.msk.bf16.vlgmr.msrb.gmra.mxu3 %vm239_vm2, %v1241_v57 }
 0x8a8   :  { %2589 = vmatmul.msk.bf16.vlgmr.msra.gmra.mxu0 %vm239_vm2, %v1242_v58 }
 0x8a9   :  { %1710 = vmatpush.bf16.xpose.msrb.mxu0 %v1701_v52  ;;  %v1605_v23 = vpop.permute.xlu0 %1604 }
 0x8ac   :  { %v1140_v60 = vpop.permute.xlu1 %1139 }
 0x8ad   :  { %v1230_v61 = vadd.f32 %v1229_v59, %v1140_v60  ;;  %v2704_v60 = vld [vmem:[%s3508_s1 + $0x20] sm:$0xff] }
 0x8af   :  { %v1243_v62 = vpack.c.bf16 %v1230_v61, %v1230_v61 }
 0x8b1   :  { %2590 = vmatmul.msk.bf16.vlgmr.msra.gmra.mxu1 %vm239_vm2, %v1243_v62  ;;  %v1620_v36 = vpop.permute.xlu0 %1619 }
 0x8b4   :  { %v1600_v18 = vpop.permute.xlu1 %1599 }
 0x8b8   :  { %2625 = vmatmul.msk.bf16.vlgmr.msrb.gmra.mxu0 %vm150_vm0, %v2700_v63 }
 0x8b9   :  { %v1630_v49 = vpop.permute.xlu0 %1629 }
 0x8bc   :  { %v1615_v30 = vpop.permute.xlu1 %1614 }
 0x8c4   :  { %v1625_v42 = vpop.permute.xlu1 %1624 }
 0x8c8   :  { %2626 = vmatmul.msk.bf16.gmra.mxu0 %vm150_vm0, %v2701_v0 }
 0x8d8   :  { %2627 = vmatmul.msk.bf16.gmra.mxu0 %vm150_vm0, %v2702_v2 }
 0x8e8   :  { %2628 = vmatmul.msk.bf16.gmra.mxu0 %vm150_vm0, %v2703_v4 }
 0x8f8   :  { %2629 = vmatmul.msk.bf16.gmra.mxu0 %vm150_vm0, %v2704_v60 }
 0x915   :  { %v1452_v12 = vpop.f32.mrf.mxu1 }
 0x91d   :  { %v1454_v3 = vpop.f32.mrf.mxu1 }
 0x925   :  { %v1490_v5 = vpop.f32.mrf.mxu0 }
 0x929   :  { %v1471_v6 = vpop.f32.mrf.mxu3 }
 0x92a   :  { %v1513_v10 = vpack.c.bf16 %v1471_v6, %v1452_v12 }
 0x92c   :  { %1519 = vxpose.xlu2.c.b16.start [1/2] (short) (narrow) %v1513_v10, 16 }
 0x92d   :  { %v1492_v14 = vpop.f32.mrf.mxu0 }
 0x92e   :  { %v1509_v7 = vpop.f32.mrf.mxu1 }
 0x92f   :  { %v1514_v13 = vpack.c.bf16 %v1509_v7, %v1490_v5  ;;  %v1588_v7 = vld [vmem:[%s3509_s2 + $0x40] sm:$0xff] }
 0x931   :  { %v1473_v9 = vpop.f32.mrf.mxu3 }
 0x932   :  { %v2705_v9 = vld [vmem:[%s3508_s1 + $0x28] sm:$0xff] }
 0x933   :  { %2630 = vmatmul.msk.bf16.gmra.mxu0 %vm150_vm0, %v2705_v9 }
 0x935   :  { %v1712_v1 = vpop.f32.mrf.mxu0 }
 0x936   :  { %v1511_v16 = vpop.f32.mrf.mxu1  ;;  %v1713_v17 = vadd.f32 %v1712_v1, %v1595_v11 }
 0x938   :  { %v1742_v20 = vpack.c.bf16 %v1713_v17, %v1713_v17 }
 0x93c   :  { %1520 = vxpose.xlu2.c.b16.end [2/2] (short) (narrow) %v1514_v13, 16 }
 0x93d   :  { %v1714_v19 = vpop.f32.mrf.mxu0 }
 0x93e   :  { %v1715_v37 = vadd.f32 %v1714_v19, %v1600_v18 }
 0x940   :  { %v1743_v21 = vpack.c.bf16 %v1715_v37, %v1715_v37 }
 0x942   :  { %2734 = vxpose.binary.xlu1.c.b16.start.end [1/2] (short) (narrow) %v1743_v21, %v1742_v20, 16 }
 0x945   :  { %v1717_v22 = vpop.f32.mrf.mxu0 }
 0x946   :  { %v1718_v24 = vadd.f32 %v1717_v22, %v1605_v23 }
 0x948   :  { %v1744_v28 = vpack.c.bf16 %v1718_v24, %v1718_v24 }
 0x94d   :  { %v1719_v26 = vpop.f32.mrf.mxu0 }
 0x94e   :  { %v1720_v27 = vadd.f32 %v1719_v26, %v1610_v25 }
 0x950   :  { %v1745_v29 = vpack.c.bf16 %v1720_v27, %v1720_v27 }
 0x952   :  { %2737 = vxpose.binary.xlu0.c.b16.start.end [1/2] (short) (narrow) %v1745_v29, %v1744_v28, 16  ;;  %v1591_v28 = vld [vmem:[%s3509_s2 + $0x58] sm:$0xff] }
 0x955   :  { %v1722_v31 = vpop.f32.mrf.mxu0 }
 0x956   :  { %v1723_v32 = vadd.f32 %v1722_v31, %v1615_v30  ;;  %v1589_v31 = vld [vmem:[%s3509_s2 + $0x48] sm:$0xff] }
 0x958   :  { %v1746_v33 = vpack.c.bf16 %v1723_v32, %v1723_v32  ;;  %v1590_v32 = vld [vmem:[%s3509_s2 + $0x50] sm:$0xff] }
 0x95a   :  { %v1774_v35 = vsel %vm243_vm1, %v1746_v33, 0  ;;  %v3321_v33 = vld [vmem:[%s3514_s7] ss:$0 sm:$0xff] }
 0x95b   :  { %1783 = vmatpush.bf16.msrb.mxu1 %v1774_v35  ;;  %v2079_v35 = vld [vmem:[#allocation2] sm:$0xff] }
 0x95d   :  { %v1724_v38 = vpop.f32.mrf.mxu0 }
 0x95e   :  { %v1725_v39 = vadd.f32 %v1724_v38, %v1620_v36  ;;  %v2085_v36 = vadd.f32 %v3321_v33, %v2079_v35  ;;  %v2075_v38 = vld [vmem:[%s3507_s0] sm:$0xff] }
 0x960   :  { %v1747_v40 = vpack.c.bf16 %v1725_v39, %v1725_v39  ;;  %v3327_v39 = vadd.f32 %v2085_v36, %v2075_v38 }
 0x962   :  { %v1809_v41 = vsel %vm243_vm1, %v1747_v40, 0 }
 0x963   :  { %1818 = vmatpush.bf16.msrb.mxu3 %v1809_v41  ;;  %v2095_v41 = vsel %vm150_vm0, %v3327_v39, 0.0 }
 0x965   :  { %v1727_v43 = vpop.f32.mrf.mxu0 }
 0x966   :  { %v1728_v44 = vadd.f32 %v1727_v43, %v1625_v42 }
 0x968   :  { %v1748_v46 = vpack.c.bf16 %v1728_v44, %v1728_v44 }
 0x96a   :  { %v1844_v47 = vsel %vm243_vm1, %v1748_v46, 0  ;;  %v2080_v46 = vld [vmem:[#allocation2 + $0x8] sm:$0xff] }
 0x96b   :  { %1853 = vmatpush.bf16.msra.mxu1 %v1844_v47  ;;  %v2086_v47 = vadd.f32 %v3321_v33, %v2080_v46 }
 0x96d   :  { %v1729_v48 = vpop.f32.mrf.mxu0 }
 0x96e   :  { %v1730_v50 = vadd.f32 %v1729_v48, %v1630_v49  ;;  %v2076_v48 = vld [vmem:[%s3507_s0 + $0x8] sm:$0xff]  ;;  %s2883_s0 = smov [#allocation4]  }
 0x96f   :  { %v3341_v49 = vadd.f32 %v2086_v47, %v2076_v48  ;;  %s2438_s24 = sshll.u32 %s2883_s0, 4  ;;  %s2439_s24 = int_to_ptr.vmem [resolvable:$true] %s2438_s24 }
 0x970   :  { %v1749_v51 = vpack.c.bf16 %v1730_v50, %v1730_v50 }
 0x971   :  { %v2098_v50 = vsel %vm150_vm0, %v3341_v49, 0.0 }
 0x972   :  { %v1879_v53 = vsel %vm243_vm1, %v1749_v51, 0 }
 0x9cd   :  { %v1527_v52 = vpop.trf.xlu2 }
 0x9ce   :  { %2599 = vmatmul.msk.bf16.vlgmr.msra.gmra.mxu3 %vm150_vm0, %v1527_v52 }
 0x9cf   :  { %1888 = vmatpush.bf16.msra.mxu3 %v1879_v53 }
 0x9ee   :  { %v2735_v54 = vpop.trf.xlu1 }
 0x9ef   :  { %2631 = vmatmul.msk.bf16.vlgmr.msrb.gmra.mxu1 %vm239_vm2, %v2735_v54 }
 0x9f6   :  { %v2736_v55 = vpop.trf.xlu1 }
 0x9f7   :  { %2632 = vmatmul.msk.bf16.vlgmr.msrb.gmra.mxu3 %vm239_vm2, %v2736_v55  ;;  %v1732_v55 = vpop.f32.mrf.mxu0 }
 0x9fe   :  { %v2738_v56 = vpop.trf.xlu0 }
 0x9ff   :  { %2633 = vmatmul.msk.bf16.vlgmr.msra.gmra.mxu1 %vm239_vm2, %v2738_v56 }
 0xa06   :  { %v2739_v57 = vpop.trf.xlu0 }
 0xa07   :  { %2634 = vmatmul.msk.bf16.vlgmr.msra.gmra.mxu3 %vm239_vm2, %v2739_v57 }
 0xa51   :  { %v1559_v58 = vpop.f32.mrf.mxu3 }
 0xa52   :  { %1564 = vst.msk [vmem:[#allocation2 + $0x10] sm:$0xff] %vm150_vm0, %v1559_v58 }
 0xa59   :  { %v1561_v59 = vpop.f32.mrf.mxu3  ;;  %v2081_v40 = vld [vmem:[#allocation2 + $0x10] sm:$0xff] }
 0xa5a   :  { %v2087_v42 = vadd.f32 %v3321_v33, %v2081_v40 }
 0xa5c   :  { %v3333_v43 = vadd.f32 %v3145_v8, %v2087_v42 }
 0xa5e   :  { %v2101_v44 = vsel %vm150_vm0, %v3333_v43, 0.0 }
 0xa6c   :  { %v1785_v61 = vpop.f32.mrf.mxu1 }
 0xa6d   :  { %v1894_v62 = vsel %vm239_vm2, %v1785_v61, -inf }
 0xa6e   :  { %1895 = vmax.xlane.f32.xlu0 %v1894_v62  ;;  %v1734_v62 = vpop.f32.mrf.mxu0 }
 0xa74   :  { %v1787_v63 = vpop.f32.mrf.mxu1 }
 0xa7a   :  { %v1820_v0 = vpop.f32.mrf.mxu3 }
 0xa7b   :  { %v1897_v2 = vsel %vm239_vm2, %v1820_v0, -inf }
 0xa7c   :  { %v1855_v4 = vpop.f32.mrf.mxu1  ;;  %1898 = vmax.xlane.f32.xlu2 %v1897_v2 }
 0xa7d   :  { %v1900_v12 = vsel %vm239_vm2, %v1855_v4, -inf }
 0xa7e   :  { %1901 = vmax.xlane.f32.xlu1 %v1900_v12 }
 0xa82   :  { %v1822_v3 = vpop.f32.mrf.mxu3 }
 0xa84   :  { %v1857_v5 = vpop.f32.mrf.mxu1 }
 0xa8a   :  { %v1890_v6 = vpop.f32.mrf.mxu3 }
 0xa8b   :  { %v1903_v10 = vsel %vm239_vm2, %v1890_v6, -inf }
 0xa8c   :  { %1904 = vmax.xlane.f32.xlu0 %v1903_v10  ;;  %v1737_v10 = vpop.f32.mrf.mxu0 }
 0xa92   :  { %v1892_v14 = vpop.f32.mrf.mxu3 }
 0xa97   :  { %1634 = vperm.xlu1 %2723, %v1588_v7  }
 0xae1   :  { %v1896_v1 = vpop.xlane.xlu0 %1895 }
 0xae2   :  { %v1906_v16 = vsub.f32 %v1785_v61, %v1896_v1 }
 0xae4   :  { %v1910_v13 = vmul.f32 1.442695, %v1906_v16 }
 0xae6   :  { %2795 = vpow2.f32 %v1910_v13 }
 0xaec   :  { %v2796_v11 = vpop.eup %2795 }
 0xaed   :  { %v1918_v17 = vsel %vm239_vm2, %v2796_v11, 0.0 }
 0xaee   :  { %1919 = vadd.xlane.f32.xlu1 %v1918_v17 }
 0xaef   :  { %v1899_v18 = vpop.xlane.xlu2 %1898 }
 0xaf0   :  { %v1907_v19 = vsub.f32 %v1820_v0, %v1899_v18  ;;  %v2882_v18 = vmov 32.0  }
 0xaf1   :  { %v1902_v34 = vpop.xlane.xlu1 %1901 }
 0xaf2   :  { %v1912_v37 = vmul.f32 1.442695, %v1907_v19  ;;  %v1908_v20 = vsub.f32 %v1855_v4, %v1902_v34  ;;  %v1739_v19 = vpop.f32.mrf.mxu0 }
 0xaf4   :  { %2797 = vpow2.f32 %v1912_v37  ;;  %v1914_v21 = vmul.f32 1.442695, %v1908_v20 }
 0xaf6   :  { %2799 = vpow2.f32 %v1914_v21 }
 0xafa   :  { %v2798_v15 = vpop.eup %2797 }
 0xafb   :  { %v1921_v22 = vsel %vm239_vm2, %v2798_v15, 0.0 }
 0xafc   :  { %v2800_v23 = vpop.eup %2799  ;;  %1922 = vadd.xlane.f32.xlu2 %v1921_v22 }
 0xafd   :  { %v1924_v24 = vsel %vm239_vm2, %v2800_v23, 0.0 }
 0xafe   :  { %1925 = vadd.xlane.f32.xlu0 %v1924_v24 }
 0xaff   :  { %v1905_v25 = vpop.xlane.xlu0 %1904 }
 0xb00   :  { %v1909_v26 = vsub.f32 %v1890_v6, %v1905_v25 }
 0xb02   :  { %v1916_v27 = vmul.f32 1.442695, %v1909_v26 }
 0xb04   :  { %2801 = vpow2.f32 %v1916_v27 }
 0xb07   :  { %1649 = vperm.xlu1 %2723, %v1591_v28  }
 0xb09   :  { %v1635_v51 = vpop.permute.xlu1 %1634 }
 0xb0a   :  { %v3308_v29 = vpop.eup %2801  ;;  %v1733_v57 = vadd.f32 %v1732_v55, %v1635_v51 }
 0xb0b   :  { %v1927_v30 = vsel %vm239_vm2, %v3308_v29, 0.0 }
 0xb0c   :  { %1928 = vadd.xlane.f32.xlu2 %v1927_v30  ;;  %v1750_v60 = vpack.c.bf16 %v1733_v57, %v1733_v57 }
 0xb12   :  { %1639 = vperm.xlu0 %2722, %v1589_v31  }
 0xb24   :  { %1644 = vperm.xlu2 %2727, %v1590_v32  }
 0xb31   :  { %2096 = vadd.xlane.f32.xlu1 %v2095_v41 }
 0xb39   :  { %2102 = vadd.xlane.f32.xlu1 %v2101_v44 }
 0xb4d   :  { %2099 = vadd.xlane.f32.xlu2 %v2098_v50 }
 0xb61   :  { %v1920_v8 = vpop.xlane.xlu1 %1919 }
 0xb62   :  { %2803 = vrcp.f32 %v1920_v8 }
 0xb68   :  { %v2804_v52 = vpop.eup %2803 }
 0xb69   :  { %v1934_v53 = vmul.f32 %v2804_v52, %v2796_v11 }
 0xb6b   :  { %v1938_v54 = vpack.c.bf16 %v1934_v53, %v1934_v53 }
 0xb6d   :  { %1943 = vst.msk [vmem:[#allocation4 + $0x30] sm:$0xf] %vm413_vm3, %v1938_v54  ;;  %v1951_v56 = vsel %vm239_vm2, %v1938_v54, 0 }
 0xb6e   :  { %1960 = vmatpush.bf16.xpose.msrb.mxu1 %v1951_v56 }
 0xb6f   :  { %v1923_v58 = vpop.xlane.xlu2 %1922 }
 0xb70   :  { %2805 = vrcp.f32 %v1923_v58 }
 0xb71   :  { %v1926_v59 = vpop.xlane.xlu0 %1925 }
 0xb72   :  { %2807 = vrcp.f32 %v1926_v59  ;;  %v2709_v59 = vld [vmem:[%s3511_s4 + $0x8] sm:$0xff] }
 0xb75   :  { %2635 = vmatmul.msk.bf16.vlgmr.msrb.gmra.mxu1 %vm239_vm2, %v1750_v60 }
 0xb76   :  { %v2806_v61 = vpop.eup %2805 }
 0xb77   :  { %v1935_v63 = vmul.f32 %v2806_v61, %v2798_v15  ;;  %v2708_v61 = vld [vmem:[%s3511_s4] sm:$0xff] }
 0xb78   :  { %v2808_v0 = vpop.eup %2807 }
 0xb79   :  { %v1939_v2 = vpack.c.bf16 %v1935_v63, %v1935_v63  ;;  %v1936_v4 = vmul.f32 %v2808_v0, %v2800_v23  ;;  %v1650_v34 = vpop.permute.xlu1 %1649  ;;  %v2707_v63 = vld [vmem:[%s3510_s3 + $0x8] sm:$0xff] }
 0xb7a   :  { %v1740_v21 = vadd.f32 %v1739_v19, %v1650_v34  ;;  %v3395_v34 = vld [vmem:[%s3514_s7 + $0x2] ss:$0 sm:$0xff] }
 0xb7b   :  { %1944 = vst.msk [vmem:[#allocation4 + $0x34] sm:$0xf] %vm413_vm3, %v1939_v2  ;;  %v1970_v12 = vsel %vm239_vm2, %v1939_v2, 0  ;;  %v1940_v3 = vpack.c.bf16 %v1936_v4, %v1936_v4 }
 0xb7c   :  { %1979 = vmatpush.bf16.xpose.msrb.mxu2 %v1970_v12  ;;  %v1753_v22 = vpack.c.bf16 %v1740_v21, %v1740_v21  ;;  %v2706_v12 = vld [vmem:[%s3510_s3] sm:$0xff]  ;;  %s2887_s3 = smov 128  }
 0xb7d   :  { %1945 = vst.msk [vmem:[#allocation4 + $0x38] sm:$0xf] %vm413_vm3, %v1940_v3  ;;  %v1989_v5 = vsel %vm239_vm2, %v1940_v3, 0 }
 0xb7e   :  { %1998 = vmatpush.bf16.xpose.msrb.mxu3 %v1989_v5 }
 0xb7f   :  { %v1929_v6 = vpop.xlane.xlu2 %1928 }
 0xb80   :  { %2809 = vrcp.f32 %v1929_v6 }
 0xb81   :  { %2811 = vrcp.f32 %v2882_v18 }
 0xb84   :  { %v1640_v14 = vpop.permute.xlu0 %1639  ;;  %2066 = vmatpush.bf16.msra.mxu2 %v2707_v63 }
 0xb85   :  { %v1735_v7 = vadd.f32 %v1734_v62, %v1640_v14 }
 0xb86   :  { %v2810_v9 = vpop.eup %2809  ;;  %2234 = vmatpush.bf16.msra.mxu3 %v2709_v59 }
 0xb87   :  { %v1751_v1 = vpack.c.bf16 %v1735_v7, %v1735_v7  ;;  %v1645_v16 = vpop.permute.xlu2 %1644  ;;  %v1937_v13 = vmul.f32 %v2810_v9, %v3308_v29  ;;  %v2812_v15 = vpop.eup %2811 }
 0xb88   :  { %v1738_v11 = vadd.f32 %v1737_v10, %v1645_v16  ;;  %v2108_v23 = vmul.f32 32.0, %v2812_v15  ;;  %vm2112_vm4 = vweird.f32 %v2812_v15  ;;  %2067 = vmatpush.bf16.msra.mxu2 %v2706_v12 }
 0xb89   :  { %2636 = vmatmul.msk.bf16.vlgmr.msrb.gmra.mxu2 %vm239_vm2, %v1751_v1  ;;  %v1941_v17 = vpack.c.bf16 %v1937_v13, %v1937_v13 }
 0xb8a   :  { %v1752_v37 = vpack.c.bf16 %v1738_v11, %v1738_v11  ;;  %v2109_v24 = vsub.f32 1.0, %v2108_v23  ;;  %2235 = vmatpush.bf16.msra.mxu3 %v2708_v61  ;;  %v3390_v11 = vld [vmem:[%s3514_s7 + $0x1] ss:$0 sm:$0xff] }
 0xb8b   :  { %1946 = vst.msk [vmem:[#allocation4 + $0x3c] sm:$0xf] %vm413_vm3, %v1941_v17  ;;  %v2008_v20 = vsel %vm239_vm2, %v1941_v17, 0 }
 0xb8c   :  { %2637 = vmatmul.msk.bf16.vlgmr.msrb.gmra.mxu3 %vm239_vm2, %v1752_v37  ;;  %2017 = vmatpush.bf16.xpose.msra.mxu1 %v2008_v20  ;;  %v2110_v25 = vmul.f32 %v2812_v15, %v2109_v24 }
 0xb8e   :  { %v2111_v26 = vadd.f32 %v2812_v15, %v2110_v25  ;;  %v2713_v25 = vld [vmem:[%s3513_s6 + $0x18] sm:$0xff] }
 0xb90   :  { %v3358_v27 = vsel %vm2112_vm4, %v2812_v15, %v2111_v26  ;;  %v2712_v26 = vld [vmem:[%s3513_s6 + $0x10] sm:$0xff] }
 0xb93   :  { %2638 = vmatmul.msk.bf16.vlgmr.msra.gmra.mxu1 %vm239_vm2, %v1753_v22 }
 0xb94   :  { %2298 = vmatpush.bf16.msrb.mxu1 %v2713_v25 }
 0xb98   :  { %2299 = vmatpush.bf16.msrb.mxu1 %v2712_v26 }
 0xba4   :  { %v2097_v28 = vpop.xlane.xlu1 %2096 }
 0xba5   :  { %v2114_v29 = vmul.f32 %v3358_v27, %v2097_v28  ;;  %v2711_v28 = vld [vmem:[%s3513_s6 + $0x8] sm:$0xff] }
 0xba6   :  { %2300 = vmatpush.bf16.msrb.mxu1 %v2711_v28 }
 0xba7   :  { %v2118_v30 = vsub.f32 %v3327_v39, %v2114_v29  ;;  %v2710_v29 = vld [vmem:[%s3513_s6] sm:$0xff] }
 0xba9   :  { %v2122_v31 = vmul.f32 %v2118_v30, %v2118_v30 }
 0xbaa   :  { %2301 = vmatpush.bf16.msrb.mxu1 %v2710_v29 }
 0xbab   :  { %v2126_v32 = vsel %vm150_vm0, %v2122_v31, 0.0  ;;  %v3418_v31 = vld [vmem:[%s3512_s5] ss:$0 sm:$0xff] }
 0xbac   :  { %v2103_v35 = vpop.xlane.xlu1 %2102  ;;  %2127 = vadd.xlane.f32.xlu2 %v2126_v32 }
 0xbad   :  { %v2116_v36 = vmul.f32 %v3358_v27, %v2103_v35 }
 0xbaf   :  { %v3365_v38 = vsub.f32 %v3333_v43, %v2116_v36 }
 0xbb1   :  { %v2124_v40 = vmul.f32 %v3365_v38, %v3365_v38 }
 0xbb3   :  { %v2132_v41 = vsel %vm150_vm0, %v2124_v40, 0.0 }
 0xbb4   :  { %2133 = vadd.xlane.f32.xlu2 %v2132_v41 }
 0xbc0   :  { %v2100_v42 = vpop.xlane.xlu2 %2099 }
 0xbc1   :  { %v2115_v44 = vmul.f32 %v3358_v27, %v2100_v42 }
 0xbc3   :  { %v2119_v39 = vsub.f32 %v3341_v49, %v2115_v44 }
 0xbc5   :  { %v2123_v46 = vmul.f32 %v2119_v39, %v2119_v39 }
 0xbc7   :  { %v2129_v47 = vsel %vm150_vm0, %v2123_v46, 0.0 }
 0xbc8   :  { %2130 = vadd.xlane.f32.xlu1 %v2129_v47 }
 0xbf2   :  { %v1962_v48 = vpop.f32.mrf.mxu1 }
 0xbfa   :  { %v1964_v50 = vpop.f32.mrf.mxu1 }
 0xc0c   :  { %v1981_v51 = vpop.f32.mrf.mxu2 }
 0xc0d   :  { %v2023_v43 = vpack.c.bf16 %v1981_v51, %v1962_v48  ;;  %v3430_v51 = vld [vmem:[%s3514_s7 + $0x3] ss:$0 sm:$0xff] }
 0xc0f   :  { %2029 = vxpose.xlu0.c.b16.start [1/2] (short) (narrow) %v2023_v43, 16  ;;  %v2000_v8 = vpop.f32.mrf.mxu3 }
 0xc10   :  { %v2019_v52 = vpop.f32.mrf.mxu1 }
 0xc11   :  { %v2024_v56 = vpack.c.bf16 %v2019_v52, %v2000_v8 }
 0xc14   :  { %v1983_v53 = vpop.f32.mrf.mxu2 }
 0xc17   :  { %v2002_v54 = vpop.f32.mrf.mxu3 }
 0xc18   :  { %v2021_v55 = vpop.f32.mrf.mxu1 }
 0xc1f   :  { %2030 = vxpose.xlu0.c.b16.end [2/2] (short) (narrow) %v2024_v56, 16  ;;  %v2128_v57 = vpop.xlane.xlu2 %2127 }
 0xc20   :  { %v2138_v58 = vmul.f32 %v2128_v57, %v3358_v27 }
 0xc22   :  { %v2142_v49 = vadd.f32 1e-05, %v2138_v58 }
 0xc24   :  { %2813 = vrsqrt.f32 %v2142_v49  ;;  %vm2152_vm6 = vweird.f32 %v2142_v49 }
 0xc2a   :  { %v2814_v60 = vpop.eup %2813 }
 0xc2b   :  { %v2147_v62 = vmul.f32 %v2814_v60, %v2142_v49  ;;  %vm2153_vm5 = vweird.f32 %v2814_v60 }
 0xc2c   :  { %vm2154_vm7 = vmor %vm2152_vm6, %vm2153_vm5 }
 0xc2d   :  { %v2148_v0 = vmul.f32 %v2814_v60, %v2147_v62 }
 0xc2f   :  { %v2149_v5 = vmul.f32 0.5, %v2148_v0 }
 0xc31   :  { %v2150_v6 = vsub.f32 1.5, %v2149_v5 }
 0xc33   :  { %v2151_v14 = vmul.f32 %v2814_v60, %v2150_v6 }
 0xc35   :  { %v2155_v1 = vsel %vm2154_vm7, %v2814_v60, %v2151_v14  ;;  %v2134_v60 = vpop.xlane.xlu2 %2133 }
 0xc36   :  { %v2186_v17 = vmul.f32 %v2155_v1, %v2118_v30  ;;  %v2140_v61 = vmul.f32 %v2134_v60, %v3358_v27 }
 0xc38   :  { %v2191_v37 = vmul.f32 %v3390_v11, %v2186_v17  ;;  %v2144_v62 = vadd.f32 1e-05, %v2140_v61 }
 0xc3a   :  { %v2196_v15 = vadd.f32 %v3395_v34, %v2191_v37  ;;  %vm2172_vm13 = vweird.f32 %v2144_v62 }
 0xc3b   :  { %v2131_v2 = vpop.xlane.xlu1 %2130 }
 0xc3c   :  { %v2139_v4 = vmul.f32 %v2131_v2, %v3358_v27 }
 0xc3e   :  { %v2143_v3 = vadd.f32 1e-05, %v2139_v4 }
 0xc40   :  { %2815 = vrsqrt.f32 %v2143_v3  ;;  %vm2162_vm9 = vweird.f32 %v2143_v3 }
 0xc41   :  { %2817 = vrsqrt.f32 %v2144_v62 }
 0xc46   :  { %v2816_v10 = vpop.eup %2815 }
 0xc47   :  { %v2157_v7 = vmul.f32 %v2816_v10, %v2143_v3  ;;  %vm2163_vm8 = vweird.f32 %v2816_v10  ;;  %v2818_v63 = vpop.eup %2817 }
 0xc48   :  { %vm2164_vm10 = vmor %vm2162_vm9, %vm2163_vm8  ;;  %v2167_v0 = vmul.f32 %v2818_v63, %v2144_v62  ;;  %vm2173_vm12 = vweird.f32 %v2818_v63 }
 0xc49   :  { %v2158_v9 = vmul.f32 %v2816_v10, %v2157_v7  ;;  %vm2174_vm14 = vmor %vm2172_vm13, %vm2173_vm12 }
 0xc4a   :  { %v2168_v2 = vmul.f32 %v2818_v63, %v2167_v0 }
 0xc4b   :  { %v2159_v16 = vmul.f32 0.5, %v2158_v9 }
 0xc4c   :  { %v2169_v5 = vmul.f32 0.5, %v2168_v2 }
 0xc4d   :  { %v2160_v13 = vsub.f32 1.5, %v2159_v16 }
 0xc4e   :  { %v2170_v6 = vsub.f32 1.5, %v2169_v5 }
 0xc4f   :  { %v2161_v18 = vmul.f32 %v2816_v10, %v2160_v13 }
 0xc50   :  { %v2171_v14 = vmul.f32 %v2818_v63, %v2170_v6 }
 0xc51   :  { %v2165_v19 = vsel %vm2164_vm10, %v2816_v10, %v2161_v18 }
 0xc52   :  { %v2187_v20 = vmul.f32 %v2165_v19, %v2119_v39  ;;  %v2175_v1 = vsel %vm2174_vm14, %v2818_v63, %v2171_v14 }
 0xc53   :  { %v2188_v17 = vmul.f32 %v2175_v1, %v3365_v38 }
 0xc54   :  { %v2192_v21 = vmul.f32 %v3390_v11, %v2187_v20 }
 0xc55   :  { %v2193_v20 = vmul.f32 %v3390_v11, %v2188_v17 }
 0xc56   :  { %v2197_v22 = vadd.f32 %v3395_v34, %v2192_v21 }
 0xc58   :  { %v2200_v23 = vpack.c.bf16 %v2197_v22, %v2196_v15 }
 0xc5a   :  { %2656 = vmatmul.msk.bf16.vlgmr.msra.gmra.mxu3 %vm150_vm0, %v2200_v23 }
 0xcbb   :  { %v2037_v24 = vpop.trf.xlu0 }
 0xcbc   :  { %2647 = vmatmul.msk.bf16.vlgmr.msra.gmra.mxu2 %vm150_vm0, %v2037_v24 }
 0xcdd   :  { %v2237_v30 = vpop.f32.mrf.mxu3 }
 0xcde   :  { %v2238_v32 = vadd.f32 %v3418_v31, %v2237_v30 }
 0xce0   :  { %v2247_v40 = vmax.f32 %v2238_v32, 0.0 }
 0xce5   :  { %v2239_v35 = vpop.f32.mrf.mxu3 }
 0xce6   :  { %v2240_v36 = vadd.f32 %v3418_v31, %v2239_v35 }
 0xce8   :  { %v2248_v41 = vmax.f32 %v2240_v36, 0.0 }
 0xcea   :  { %v2251_v42 = vpack.c.bf16 %v2248_v41, %v2247_v40 }
 0xcec   :  { %2674 = vmatmul.msk.bf16.vlgmr.msrb.gmra.mxu1 %vm2287_vm11, %v2251_v42 }
 0xd3f   :  { %v2069_v44 = vpop.f32.mrf.mxu2 }
 0xd40   :  { %2074 = vst.msk [vmem:[#allocation2 + $0x18] sm:$0xff] %vm150_vm0, %v2069_v44 }
 0xd47   :  { %v2082_v39 = vld [vmem:[#allocation2 + $0x18] sm:$0xff]  ;;  %v2071_v46 = vpop.f32.mrf.mxu2 }
 0xd48   :  { %v2088_v47 = vadd.f32 %v3321_v33, %v2082_v39 }
 0xd4a   :  { %v2092_v48 = vadd.f32 %v3243_v45, %v2088_v47 }
 0xd4c   :  { %v2104_v50 = vsel %vm150_vm0, %v2092_v48, 0.0 }
 0xd4d   :  { %2105 = vadd.xlane.f32.xlu0 %v2104_v50 }
 0xd69   :  { %v2303_v43 = vpop.f32.mrf.mxu1 }
 0xd6a   :  { %v2304_v8 = vadd.f32 %v3430_v51, %v2303_v43 }
 0xd6c   :  { %v3433_v52 = vadd.f32 %v2304_v8, %v2196_v15  ;;  %v2198_v15 = vadd.f32 %v3395_v34, %v2193_v20 }
 0xd6e   :  { %v2319_v53 = vsel %vm150_vm0, %v3433_v52, 0.0 }
 0xd6f   :  { %2320 = vadd.xlane.f32.xlu2 %v2319_v53 }
 0xd71   :  { %v2305_v55 = vpop.f32.mrf.mxu1 }
 0xd72   :  { %v2306_v57 = vadd.f32 %v3430_v51, %v2305_v55 }
 0xd74   :  { %v2314_v49 = vadd.f32 %v2306_v57, %v2197_v22 }
 0xd76   :  { %v2322_v59 = vsel %vm150_vm0, %v2314_v49, 0.0 }
 0xdc0   :  { %v2106_v33 = vpop.xlane.xlu0 %2105 }
 0xdc1   :  { %v2117_v45 = vmul.f32 %v3358_v27, %v2106_v33 }
 0xdc3   :  { %v2121_v54 = vsub.f32 %v2092_v48, %v2117_v45 }
 0xdc5   :  { %v2125_v56 = vmul.f32 %v2121_v54, %v2121_v54 }
 0xdc7   :  { %v2135_v58 = vsel %vm150_vm0, %v2125_v56, 0.0 }
 0xdc8   :  { %2136 = vadd.xlane.f32.xlu1 %v2135_v58 }
 0xdd0   :  { %2323 = vadd.xlane.f32.xlu1 %v2322_v59 }
 0xde2   :  { %v2321_v32 = vpop.xlane.xlu2 %2320 }
 0xde3   :  { %v2331_v35 = vmul.f32 %v2321_v32, %v3358_v27 }
 0xde5   :  { %v2335_v40 = vsub.f32 %v3433_v52, %v2331_v35 }
 0xde7   :  { %v2339_v46 = vmul.f32 %v2335_v40, %v2335_v40 }
 0xde9   :  { %v2343_v43 = vsel %vm150_vm0, %v2339_v46, 0.0 }
 0xe3b   :  { %v2137_v4 = vpop.xlane.xlu1 %2136 }
 0xe3c   :  { %v2141_v12 = vmul.f32 %v2137_v4, %v3358_v27 }
 0xe3e   :  { %v2145_v3 = vadd.f32 1e-05, %v2141_v12 }
 0xe40   :  { %2819 = vrsqrt.f32 %v2145_v3  ;;  %vm2182_vm1 = vweird.f32 %v2145_v3 }
 0xe43   :  { %v2324_v42 = vpop.xlane.xlu1 %2323 }
 0xe46   :  { %v2820_v10 = vpop.eup %2819 }
 0xe47   :  { %v2177_v7 = vmul.f32 %v2820_v10, %v2145_v3  ;;  %vm2183_vm15 = vweird.f32 %v2820_v10 }
 0xe48   :  { %vm2184_vm2 = vmor %vm2182_vm1, %vm2183_vm15 }
 0xe49   :  { %v2178_v9 = vmul.f32 %v2820_v10, %v2177_v7  ;;  %v3478_v7 = vld [vmem:[%s3514_s7 + $0x4] ss:$0 sm:$0xff] }
 0xe4b   :  { %v2179_v16 = vmul.f32 0.5, %v2178_v9 }
 0xe4d   :  { %v2180_v13 = vsub.f32 1.5, %v2179_v16  ;;  %v3483_v16 = vld [vmem:[%s3514_s7 + $0x5] ss:$0 sm:$0xff]  ;;  %s2884_s7 = smov 64  }
 0xe4e   :  { %2446 = dma.vmem_to_hbm [thread:$0]  %s2439_s24, 1024, %s2441_s27, [#allocation5], %s2884_s7, %s2884_s7, %s2885_s28  }
 0xe4f   :  { %v2181_v18 = vmul.f32 %v2820_v10, %v2180_v13 }
 0xe51   :  { %v2185_v19 = vsel %vm2184_vm2, %v2820_v10, %v2181_v18 }
 0xe52   :  { %v2189_v37 = vmul.f32 %v2185_v19, %v2121_v54 }
 0xe54   :  { %v2194_v21 = vmul.f32 %v3390_v11, %v2189_v37 }
 0xe56   :  { %v2199_v22 = vadd.f32 %v3395_v34, %v2194_v21 }
 0xe58   :  { %v2201_v23 = vpack.c.bf16 %v2199_v22, %v2198_v15 }
 0xe5a   :  { %2657 = vmatmul.msk.bf16.gmra.mxu3 %vm150_vm0, %v2201_v23 }
 0xedd   :  { %v2242_v24 = vpop.f32.mrf.mxu3 }
 0xede   :  { %v2243_v25 = vadd.f32 %v3418_v31, %v2242_v24 }
 0xee0   :  { %v2249_v28 = vmax.f32 %v2243_v25, 0.0 }
 0xee5   :  { %v2244_v38 = vpop.f32.mrf.mxu3 }
 0xee6   :  { %v2245_v26 = vadd.f32 %v3418_v31, %v2244_v38  ;;  %v2332_v31 = vmul.f32 %v2324_v42, %v3358_v27 }
 0xee8   :  { %v2250_v29 = vmax.f32 %v2245_v26, 0.0  ;;  %v2336_v48 = vsub.f32 %v2314_v49, %v2332_v31 }
 0xeea   :  { %v2252_v30 = vpack.c.bf16 %v2250_v29, %v2249_v28  ;;  %v2340_v8 = vmul.f32 %v2336_v48, %v2336_v48 }
 0xeec   :  { %2675 = vmatmul.msk.bf16.gmra.mxu1 %vm2287_vm11, %v2252_v30  ;;  %v2346_v52 = vsel %vm150_vm0, %v2340_v8, 0.0 }
 0xf69   :  { %v2308_v11 = vpop.f32.mrf.mxu1 }
 0xf6a   :  { %v2309_v34 = vadd.f32 %v3430_v51, %v2308_v11 }
 0xf6c   :  { %v2315_v36 = vadd.f32 %v2309_v34, %v2198_v15 }
 0xf6e   :  { %v2325_v41 = vsel %vm150_vm0, %v2315_v36, 0.0 }
 0xf6f   :  { %2326 = vadd.xlane.f32.xlu2 %v2325_v41 }
 0xf71   :  { %v2310_v44 = vpop.f32.mrf.mxu1 }
 0xf72   :  { %v2311_v39 = vadd.f32 %v3430_v51, %v2310_v44 }
 0xf74   :  { %v2316_v47 = vadd.f32 %v2311_v39, %v2199_v22 }
 0xf76   :  { %v2328_v50 = vsel %vm150_vm0, %v2316_v47, 0.0 }
 0xf77   :  { %2329 = vadd.xlane.f32.xlu1 %v2328_v50  ;;  %2344 = vadd.xlane.f32.xlu2 %v2343_v43 }
 0xf7f   :  { %2347 = vadd.xlane.f32.xlu1 %v2346_v52 }
 0xfe2   :  { %v2327_v53 = vpop.xlane.xlu2 %2326 }
 0xfe3   :  { %v2333_v33 = vmul.f32 %v2327_v53, %v3358_v27 }
 0xfe5   :  { %v3462_v45 = vsub.f32 %v2315_v36, %v2333_v33 }
 0xfe7   :  { %v2341_v51 = vmul.f32 %v3462_v45, %v3462_v45 }
 0xfe9   :  { %v2349_v54 = vsel %vm150_vm0, %v2341_v51, 0.0 }
 0xfea   :  { %v2330_v55 = vpop.xlane.xlu1 %2329  ;;  %2350 = vadd.xlane.f32.xlu2 %v2349_v54  ;;  %v2345_v56 = vpop.xlane.xlu2 %2344 }
 0xfeb   :  { %v2334_v57 = vmul.f32 %v2330_v55, %v3358_v27  ;;  %v2355_v58 = vmul.f32 %v2345_v56, %v3358_v27 }
 0xfed   :  { %v3469_v49 = vsub.f32 %v2316_v47, %v2334_v57  ;;  %v2359_v59 = vadd.f32 1e-05, %v2355_v58 }
 0xfef   :  { %2821 = vrsqrt.f32 %v2359_v59  ;;  %v2342_v60 = vmul.f32 %v3469_v49, %v3469_v49  ;;  %vm2369_vm4 = vweird.f32 %v2359_v59 }
 0xff1   :  { %v2352_v61 = vsel %vm150_vm0, %v2342_v60, 0.0 }
 0xff2   :  { %2353 = vadd.xlane.f32.xlu1 %v2352_v61  ;;  %v2348_v62 = vpop.xlane.xlu1 %2347 }
 0xff3   :  { %v2356_v63 = vmul.f32 %v2348_v62, %v3358_v27 }
 0xff5   :  { %v2822_v0 = vpop.eup %2821  ;;  %v2360_v2 = vadd.f32 1e-05, %v2356_v63 }
 0xff6   :  { %v2364_v4 = vmul.f32 %v2822_v0, %v2359_v59  ;;  %vm2370_vm3 = vweird.f32 %v2822_v0 }
 0xff7   :  { %2823 = vrsqrt.f32 %v2360_v2  ;;  %vm2371_vm5 = vmor %vm2369_vm4, %vm2370_vm3  ;;  %vm2379_vm7 = vweird.f32 %v2360_v2 }
 0xff8   :  { %v2365_v12 = vmul.f32 %v2822_v0, %v2364_v4 }
 0xffa   :  { %v2366_v3 = vmul.f32 0.5, %v2365_v12 }
 0xffc   :  { %v2367_v5 = vsub.f32 1.5, %v2366_v3 }
 0xffd   :  { %v2824_v6 = vpop.eup %2823 }
 0xffe   :  { %v2368_v10 = vmul.f32 %v2822_v0, %v2367_v5  ;;  %v2374_v14 = vmul.f32 %v2824_v6, %v2360_v2  ;;  %vm2380_vm6 = vweird.f32 %v2824_v6 }
 0xfff   :  { %vm2381_vm8 = vmor %vm2379_vm7, %vm2380_vm6 }
0x1000   :  { %v2372_v9 = vsel %vm2371_vm5, %v2822_v0, %v2368_v10  ;;  %v2375_v1 = vmul.f32 %v2824_v6, %v2374_v14 }
0x1001   :  { %v2403_v13 = vmul.f32 %v2372_v9, %v2335_v40 }
0x1002   :  { %v2376_v17 = vmul.f32 0.5, %v2375_v1 }
0x1003   :  { %v2408_v18 = vmul.f32 %v3478_v7, %v2403_v13 }
0x1004   :  { %v2377_v19 = vsub.f32 1.5, %v2376_v17 }
0x1005   :  { %v2413_v37 = vadd.f32 %v3483_v16, %v2408_v18 }
0x1006   :  { %v2378_v20 = vmul.f32 %v2824_v6, %v2377_v19 }
0x1007   :  { %2417 = vst.msk [vmem:[#allocation2] sm:$0xff] %vm150_vm0, %v2413_v37 }
0x1008   :  { %v2382_v21 = vsel %vm2381_vm8, %v2824_v6, %v2378_v20 }
0x1009   :  { %v2404_v15 = vmul.f32 %v2382_v21, %v2336_v48 }
0x100b   :  { %v2409_v22 = vmul.f32 %v3478_v7, %v2404_v15 }
0x100d   :  { %v2414_v23 = vadd.f32 %v3483_v16, %v2409_v22 }
0x100f   :  { %2418 = vst.msk [vmem:[#allocation2 + $0x8] sm:$0xff] %vm150_vm0, %v2414_v23 }
0x105d   :  { %v2351_v24 = vpop.xlane.xlu2 %2350 }
0x105e   :  { %v2357_v25 = vmul.f32 %v2351_v24, %v3358_v27 }
0x1060   :  { %v2361_v38 = vadd.f32 1e-05, %v2357_v25 }
0x1062   :  { %2825 = vrsqrt.f32 %v2361_v38  ;;  %vm2389_vm10 = vweird.f32 %v2361_v38 }
0x1065   :  { %v2354_v26 = vpop.xlane.xlu1 %2353 }
0x1066   :  { %v2358_v28 = vmul.f32 %v2354_v26, %v3358_v27 }
0x1068   :  { %v2826_v29 = vpop.eup %2825  ;;  %v2362_v30 = vadd.f32 1e-05, %v2358_v28 }
0x1069   :  { %v2384_v32 = vmul.f32 %v2826_v29, %v2361_v38  ;;  %vm2390_vm9 = vweird.f32 %v2826_v29 }
0x106a   :  { %2827 = vrsqrt.f32 %v2362_v30  ;;  %vm2391_vm11 = vmor %vm2389_vm10, %vm2390_vm9  ;;  %vm2399_vm13 = vweird.f32 %v2362_v30 }
0x106b   :  { %v2385_v11 = vmul.f32 %v2826_v29, %v2384_v32 }
0x106d   :  { %v2386_v35 = vmul.f32 0.5, %v2385_v11 }
0x106f   :  { %v2387_v34 = vsub.f32 1.5, %v2386_v35 }
0x1070   :  { %v2828_v36 = vpop.eup %2827 }
0x1071   :  { %v2388_v40 = vmul.f32 %v2826_v29, %v2387_v34  ;;  %v2394_v41 = vmul.f32 %v2828_v36, %v2362_v30  ;;  %vm2400_vm12 = vweird.f32 %v2828_v36 }
0x1072   :  { %vm2401_vm14 = vmor %vm2399_vm13, %vm2400_vm12 }
0x1073   :  { %v2392_v42 = vsel %vm2391_vm11, %v2826_v29, %v2388_v40  ;;  %v2395_v44 = vmul.f32 %v2828_v36, %v2394_v41 }
0x1074   :  { %v2405_v31 = vmul.f32 %v2392_v42, %v3462_v45 }
0x1075   :  { %v2396_v39 = vmul.f32 0.5, %v2395_v44 }
0x1076   :  { %v2410_v27 = vmul.f32 %v3478_v7, %v2405_v31 }
0x1077   :  { %v2397_v46 = vsub.f32 1.5, %v2396_v39 }
0x1078   :  { %v2415_v47 = vadd.f32 %v3483_v16, %v2410_v27 }
0x1079   :  { %v2398_v48 = vmul.f32 %v2828_v36, %v2397_v46 }
0x107a   :  { %2419 = vst.msk [vmem:[#allocation2 + $0x10] sm:$0xff] %vm150_vm0, %v2415_v47 }
0x107b   :  { %v2402_v50 = vsel %vm2401_vm14, %v2828_v36, %v2398_v48 }
0x107c   :  { %v2406_v43 = vmul.f32 %v2402_v50, %v3469_v49 }
0x107e   :  { %v2411_v8 = vmul.f32 %v3478_v7, %v2406_v43 }
0x1080   :  { %v2416_v52 = vadd.f32 %v3483_v16, %v2411_v8 }
0x1082   :  { %2420 = vst.msk [vmem:[#allocation2 + $0x18] sm:$0xff] %vm150_vm0, %v2416_v52 }
0x1083   :  { %2433 = dma.vmem_to_hbm [thread:$0]  %s2426_s29, 512, %s2428_s10, [#allocation3], %s2887_s3, %s2887_s3, %s2888_s11  }
0x1084   :  { %2877 = dma.done.wait [#allocation3], 512  }
0x1085   :  { %2878 = vsyncadd [#allocation3], 4294966784 }
0x1086   :  { %2879 = dma.done.wait [#allocation5], 1024  }
0x1087   :  { %2880 = vsyncadd [#allocation5], 4294966272 }
0x1088   :  { %2455 = vsyncpa [#allocation3], 1 }
0x1089   :  { %2456 = vsyncpa [#allocation5], 1 }

</bundles_post_ra>
